<compile_context>
chip_gen: v7x
topology: tpu7x:2x2x1
jax: 0.10.0
libtpu: 0.0.40
codegen_flags: <defaults>
</compile_context>

<pallas_src>
import jax
import jax.numpy as jnp
from jax.experimental import pallas as pl
from jax.experimental.pallas import tpu as pltpu


def char_conv_kernel(x_ref, w1_ref, b1_ref, w2_ref, b2_ref, w3_ref, b3_ref,
                     out_ref, y1p_ref, y2p_ref):
    # x_ref:   (1, L, E)  channels-last input block (one batch element)
    # w*_ref:  (K, Cin, Cout) tap-major weights;  b*_ref: (1, Cout) bias
    # out_ref: (1, L, 4F) channels-last output block
    # y1p_ref / y2p_ref: (L, F) VMEM scratch = zero-padded conv1 / conv2 outputs
    x = x_ref[0]                                   # (L, E)
    L = x.shape[0]
    F = b1_ref.shape[1]
    k1, k2, k3 = w1_ref.shape[0], w2_ref.shape[0], w3_ref.shape[0]
    L1, L2, L3 = L - k1 + 1, L - k2 + 1, L - k3 + 1

    def conv_valid(z, w_ref, b_ref, n_taps, l_out):
        # 'valid' Conv1d as an unrolled sum of per-tap MXU matmuls (channels-last).
        acc = jnp.zeros((l_out, w_ref.shape[-1]), jnp.float32)
        for k in range(n_taps):
            acc = acc + jnp.dot(z[k:k + l_out, :], w_ref[k],
                                preferred_element_type=jnp.float32)
        return acc + b_ref[...]

    # conv1 + ConstantPad1d(1)  -> (L, F), kept in VMEM scratch.
    y1p_ref[...] = jnp.zeros_like(y1p_ref)
    y1p_ref[1:1 + L1, :] = conv_valid(x, w1_ref, b1_ref, k1, L1)
    y1p = y1p_ref[...]

    # conv2 + ConstantPad1d(3)  -> (L, F).
    y2p_ref[...] = jnp.zeros_like(y2p_ref)
    y2p_ref[3:3 + L2, :] = conv_valid(y1p, w2_ref, b2_ref, k2, L2)
    y2p = y2p_ref[...]

    # conv3 over cat([c1p, c2p], channel): split the weight along Cin so the
    # concatenated activation is never materialised.
    acc3a = jnp.zeros((L3, F), jnp.float32)
    for k in range(k3):
        acc3a = acc3a + jnp.dot(y1p[k:k + L3, :], w3_ref[k, 0:F, :],
                                preferred_element_type=jnp.float32)
        acc3a = acc3a + jnp.dot(y2p[k:k + L3, :], w3_ref[k, F:2 * F, :],
                                preferred_element_type=jnp.float32)
    acc3a = acc3a + b3_ref[...]

    # conv3 applied directly to the (2F-channel) embedding input.
    acc3b = conv_valid(x, w3_ref, b3_ref, k3, L3)

    # Final cat([pad2(conv3a), pad2(conv3b), c1p, c2p], channel) written straight
    # into the lane-dense (L, 4F) output block; the zero init supplies the padded
    # rows and all column offsets (0, F, 2F, 3F) are 128-aligned.
    out_ref[...] = jnp.zeros_like(out_ref)
    out_ref[0, 2:2 + L3, 0:F] = acc3a.astype(out_ref.dtype)
    out_ref[0, 2:2 + L3, F:2 * F] = acc3b.astype(out_ref.dtype)
    out_ref[0, :, 2 * F:3 * F] = y1p.astype(out_ref.dtype)
    out_ref[0, :, 3 * F:4 * F] = y2p.astype(out_ref.dtype)


def char_convolution(embed_input, params):
    """embed_input: (B, L, E) float; returns (B, 4F, L) like the PyTorch module."""
    B, L, E = embed_input.shape
    w1, b1 = params["w1"], params["b1"]   # (F, E, 3),  (F,)
    w2, b2 = params["w2"], params["b2"]   # (F, F, 7),  (F,)
    w3, b3 = params["w3"], params["b3"]   # (F, 2F, 5), (F,)
    Fc = w1.shape[0]
    k1, k2, k3 = w1.shape[2], w2.shape[2], w3.shape[2]
    if not (k1 == 3 and k2 == 2 * k1 + 1 and k3 == 2 * k1 - 1):
        raise ValueError("CharConvolution's fixed paddings require cnn_filter == 3")
    if E != 2 * Fc:
        raise ValueError("conv3(embed_input) requires embedding_dim == 2*cnn_features")
    if L < k2:
        raise ValueError("sequence length too short for conv2")

    f32 = jnp.float32
    # tap-major, channels-last weights: (K, Cin, Cout)
    w1t = jnp.transpose(w1, (2, 1, 0)).astype(f32)
    w2t = jnp.transpose(w2, (2, 1, 0)).astype(f32)
    w3t = jnp.transpose(w3, (2, 1, 0)).astype(f32)
    b1r = b1.reshape(1, Fc).astype(f32)
    b2r = b2.reshape(1, Fc).astype(f32)
    b3r = b3.reshape(1, Fc).astype(f32)
    x = embed_input.astype(f32)

    L1, L2, L3 = L - k1 + 1, L - k2 + 1, L - k3 + 1
    flops = 2 * B * (L1 * k1 * E * Fc + L2 * k2 * Fc * Fc
                     + 2 * L3 * k3 * (2 * Fc) * Fc)
    bytes_accessed = 4 * (B * L * E + B * L * 4 * Fc
                          + k1 * E * Fc + k2 * Fc * Fc + k3 * 2 * Fc * Fc + 3 * Fc)

    out_cl = pl.pallas_call(
        char_conv_kernel,
        out_shape=jax.ShapeDtypeStruct((B, L, 4 * Fc), f32),
        grid_spec=pltpu.PrefetchScalarGridSpec(
            num_scalar_prefetch=0,
            grid=(B,),
            in_specs=[
                pl.BlockSpec((1, L, E), lambda b: (b, 0, 0)),        # input row
                pl.BlockSpec((k1, E, Fc), lambda b: (0, 0, 0)),      # conv1 weight
                pl.BlockSpec((1, Fc), lambda b: (0, 0)),             # conv1 bias
                pl.BlockSpec((k2, Fc, Fc), lambda b: (0, 0, 0)),     # conv2 weight
                pl.BlockSpec((1, Fc), lambda b: (0, 0)),             # conv2 bias
                pl.BlockSpec((k3, 2 * Fc, Fc), lambda b: (0, 0, 0)), # conv3 weight
                pl.BlockSpec((1, Fc), lambda b: (0, 0)),             # conv3 bias
            ],
            out_specs=pl.BlockSpec((1, L, 4 * Fc), lambda b: (b, 0, 0)),
            scratch_shapes=[
                pltpu.VMEM((L, Fc), f32),   # padded conv1 output
                pltpu.VMEM((L, Fc), f32),   # padded conv2 output
            ],
        ),
        compiler_params=pltpu.CompilerParams(dimension_semantics=("parallel",)),
        cost_estimate=pl.CostEstimate(flops=flops, transcendentals=0,
                                      bytes_accessed=bytes_accessed),
    )(x, w1t, b1r, w2t, b2r, w3t, b3r)

    # kernel is channels-last; PyTorch module returns channels-first (B, 4F, L).
    return jnp.transpose(out_cl, (0, 2, 1))


# ----------------------- pure-JAX reference (PyTorch semantics) ----------------
def _torch_conv1d(z, w, b):
    # z: (B, Cin, L), w: (Cout, Cin, K), b: (Cout,) — mimics nn.Conv1d (VALID).
    out = jax.lax.conv_general_dilated(
        z, w, window_strides=(1,), padding="VALID",
        dimension_numbers=("NCH", "OIH", "NCH"))
    return out + b[None, :, None]


def char_convolution_ref(embed_input, params):
    x = jnp.transpose(embed_input, (0, 2, 1))
    c1 = _torch_conv1d(x, params["w1"], params["b1"])
    c1p = jnp.pad(c1, ((0, 0), (0, 0), (1, 1)))
    c2 = _torch_conv1d(c1p, params["w2"], params["b2"])
    c2p = jnp.pad(c2, ((0, 0), (0, 0), (3, 3)))
    c3in = jnp.concatenate([c1p, c2p], axis=1)
    c3a = jnp.pad(_torch_conv1d(c3in, params["w3"], params["b3"]),
                  ((0, 0), (0, 0), (2, 2)))
    c3b = jnp.pad(_torch_conv1d(x, params["w3"], params["b3"]),
                  ((0, 0), (0, 0), (2, 2)))
    return jnp.concatenate([c3a, c3b, c3in], axis=1)


if __name__ == "__main__":
    # shapes implied by the module: embedding_dim == 2 * cnn_features, filter == 3
    config = {"embedding_dim": 256, "cnn_features": 128, "cnn_filter": 3}
    batch, seq = 2, 16

    E = config["embedding_dim"]
    Fc = config["cnn_features"]
    kf = config["cnn_filter"]

    key = jax.random.PRNGKey(0)
    ka, kb, kc, kd, ke, kg, kx = jax.random.split(key, 7)
    params = {
        "w1": 0.05 * jax.random.normal(ka, (Fc, E, kf), jnp.float32),
        "b1": 0.05 * jax.random.normal(kb, (Fc,), jnp.float32),
        "w2": 0.05 * jax.random.normal(kc, (Fc, Fc, 2 * kf + 1), jnp.float32),
        "b2": 0.05 * jax.random.normal(kd, (Fc,), jnp.float32),
        "w3": 0.05 * jax.random.normal(ke, (Fc, 2 * Fc, 2 * kf - 1), jnp.float32),
        "b3": 0.05 * jax.random.normal(kg, (Fc,), jnp.float32),
    }
    embed_input = jax.random.normal(kx, (batch, seq, E), jnp.float32)

    out = jax.block_until_ready(char_convolution(embed_input, params))
    assert out.shape == (batch, 4 * Fc, seq), out.shape

    ref = char_convolution_ref(embed_input, params)
    max_err = float(jnp.max(jnp.abs(out - ref)))
    assert jnp.allclose(out, ref, atol=2e-4, rtol=2e-4), f"max_err={max_err}"

    print("KERNEL_OK")
</pallas_src>

<mosaic_0001>
module attributes {stable_mosaic.version = 11 : i64} {
  func.func @char_conv_kernel(%arg0: i32, %arg1: memref<1x16x256xf32, #tpu.memory_space<vmem>>, %arg2: memref<3x256x128xf32, #tpu.memory_space<vmem>>, %arg3: memref<1x128xf32, #tpu.memory_space<vmem>>, %arg4: memref<7x128x128xf32, #tpu.memory_space<vmem>>, %arg5: memref<1x128xf32, #tpu.memory_space<vmem>>, %arg6: memref<5x256x128xf32, #tpu.memory_space<vmem>>, %arg7: memref<1x128xf32, #tpu.memory_space<vmem>>, %arg8: memref<1x16x512xf32, #tpu.memory_space<vmem>>, %arg9: memref<16x128xf32, #tpu.memory_space<vmem>>, %arg10: memref<16x128xf32, #tpu.memory_space<vmem>>) attributes {dimension_semantics = [#tpu.dimension_semantics<parallel>], iteration_bounds = array<i64: 2>, scalar_prefetch = 0 : i64, scratch_operands = 2 : i64, tpu.core_type = #tpu.core_type<tc>, window_params = [{transform_indices = @transform_0, window_bounds = array<i64: 1, 16, 256>}, {pipeline_mode = #tpu.pipeline_mode<synchronous>, transform_indices = @transform_1, window_bounds = array<i64: 3, 256, 128>}, {pipeline_mode = #tpu.pipeline_mode<synchronous>, transform_indices = @transform_2, window_bounds = array<i64: 1, 128>}, {pipeline_mode = #tpu.pipeline_mode<synchronous>, transform_indices = @transform_3, window_bounds = array<i64: 7, 128, 128>}, {pipeline_mode = #tpu.pipeline_mode<synchronous>, transform_indices = @transform_4, window_bounds = array<i64: 1, 128>}, {pipeline_mode = #tpu.pipeline_mode<synchronous>, transform_indices = @transform_5, window_bounds = array<i64: 5, 256, 128>}, {pipeline_mode = #tpu.pipeline_mode<synchronous>, transform_indices = @transform_6, window_bounds = array<i64: 1, 128>}, {transform_indices = @transform_7, window_bounds = array<i64: 1, 16, 512>}]} {
    %c0 = arith.constant 0 : index
    %c0_0 = arith.constant 0 : index
    %c0_1 = arith.constant 0 : index
    %0 = vector.load %arg1[%c0, %c0_0, %c0_1] : memref<1x16x256xf32, #tpu.memory_space<vmem>>, vector<1x16x256xf32>
    %1 = vector.shape_cast %0 : vector<1x16x256xf32> to vector<16x256xf32>
    %cst = arith.constant 0.000000e+00 : f32
    %2 = vector.broadcast %cst : f32 to vector<16x128xf32>
    %c0_2 = arith.constant 0 : index
    %c0_3 = arith.constant 0 : index
    %3 = vector.load %arg9[%c0_2, %c0_3] : memref<16x128xf32, #tpu.memory_space<vmem>>, vector<16x128xf32>
    tpu.vector_store %arg9[%c0_2, %c0_3], %2 {strides = array<i32>} : memref<16x128xf32, #tpu.memory_space<vmem>>, vector<16x128xf32>,
    %cst_4 = arith.constant 0.000000e+00 : f32
    %4 = vector.broadcast %cst_4 : f32 to vector<14x128xf32>
    %5 = vector.extract_strided_slice %1 {offsets = [0, 0], sizes = [14, 256], strides = [1, 1]} : vector<16x256xf32> to vector<14x256xf32>
    %c0_5 = arith.constant 0 : index
    %c0_6 = arith.constant 0 : index
    %c0_7 = arith.constant 0 : index
    %6 = vector.load %arg2[%c0_5, %c0_6, %c0_7] : memref<3x256x128xf32, #tpu.memory_space<vmem>>, vector<1x256x128xf32>
    %7 = vector.shape_cast %6 : vector<1x256x128xf32> to vector<256x128xf32>
    %cst_8 = arith.constant dense<0.000000e+00> : vector<14x128xf32>
    %8 = tpu.matmul %5, %7, %cst_8 {dimension_numbers = #tpu.dot_dimension_numbers<[1], [0], [0], [1], [0, 0, 1, 1], [], []>} : vector<14x256xf32>, vector<256x128xf32>, vector<14x128xf32> -> vector<14x128xf32>
    %9 = arith.addf %4, %8 : vector<14x128xf32>
    %10 = vector.extract_strided_slice %1 {offsets = [1, 0], sizes = [14, 256], strides = [1, 1]} : vector<16x256xf32> to vector<14x256xf32>
    %c1 = arith.constant 1 : index
    %c0_9 = arith.constant 0 : index
    %c0_10 = arith.constant 0 : index
    %11 = vector.load %arg2[%c1, %c0_9, %c0_10] : memref<3x256x128xf32, #tpu.memory_space<vmem>>, vector<1x256x128xf32>
    %12 = vector.shape_cast %11 : vector<1x256x128xf32> to vector<256x128xf32>
    %cst_11 = arith.constant dense<0.000000e+00> : vector<14x128xf32>
    %13 = tpu.matmul %10, %12, %cst_11 {dimension_numbers = #tpu.dot_dimension_numbers<[1], [0], [0], [1], [0, 0, 1, 1], [], []>} : vector<14x256xf32>, vector<256x128xf32>, vector<14x128xf32> -> vector<14x128xf32>
    %14 = arith.addf %9, %13 : vector<14x128xf32>
    %15 = vector.extract_strided_slice %1 {offsets = [2, 0], sizes = [14, 256], strides = [1, 1]} : vector<16x256xf32> to vector<14x256xf32>
    %c2 = arith.constant 2 : index
    %c0_12 = arith.constant 0 : index
    %c0_13 = arith.constant 0 : index
    %16 = vector.load %arg2[%c2, %c0_12, %c0_13] : memref<3x256x128xf32, #tpu.memory_space<vmem>>, vector<1x256x128xf32>
    %17 = vector.shape_cast %16 : vector<1x256x128xf32> to vector<256x128xf32>
    %cst_14 = arith.constant dense<0.000000e+00> : vector<14x128xf32>
    %18 = tpu.matmul %15, %17, %cst_14 {dimension_numbers = #tpu.dot_dimension_numbers<[1], [0], [0], [1], [0, 0, 1, 1], [], []>} : vector<14x256xf32>, vector<256x128xf32>, vector<14x128xf32> -> vector<14x128xf32>
    %19 = arith.addf %14, %18 : vector<14x128xf32>
    %c0_15 = arith.constant 0 : index
    %c0_16 = arith.constant 0 : index
    %20 = vector.load %arg3[%c0_15, %c0_16] : memref<1x128xf32, #tpu.memory_space<vmem>>, vector<1x128xf32>
    %21 = vector.broadcast %20 : vector<1x128xf32> to vector<14x128xf32>
    %22 = arith.addf %19, %21 : vector<14x128xf32>
    %c1_17 = arith.constant 1 : index
    %c0_18 = arith.constant 0 : index
    %23 = vector.load %arg9[%c1_17, %c0_18] : memref<16x128xf32, #tpu.memory_space<vmem>>, vector<14x128xf32>
    tpu.vector_store %arg9[%c1_17, %c0_18], %22 {strides = array<i32>} : memref<16x128xf32, #tpu.memory_space<vmem>>, vector<14x128xf32>,
    %c0_19 = arith.constant 0 : index
    %c0_20 = arith.constant 0 : index
    %24 = vector.load %arg9[%c0_19, %c0_20] : memref<16x128xf32, #tpu.memory_space<vmem>>, vector<16x128xf32>
    %cst_21 = arith.constant 0.000000e+00 : f32
    %25 = vector.broadcast %cst_21 : f32 to vector<16x128xf32>
    %c0_22 = arith.constant 0 : index
    %c0_23 = arith.constant 0 : index
    %26 = vector.load %arg10[%c0_22, %c0_23] : memref<16x128xf32, #tpu.memory_space<vmem>>, vector<16x128xf32>
    tpu.vector_store %arg10[%c0_22, %c0_23], %25 {strides = array<i32>} : memref<16x128xf32, #tpu.memory_space<vmem>>, vector<16x128xf32>,
    %cst_24 = arith.constant 0.000000e+00 : f32
    %27 = vector.broadcast %cst_24 : f32 to vector<10x128xf32>
    %28 = vector.extract_strided_slice %24 {offsets = [0, 0], sizes = [10, 128], strides = [1, 1]} : vector<16x128xf32> to vector<10x128xf32>
    %c0_25 = arith.constant 0 : index
    %c0_26 = arith.constant 0 : index
    %c0_27 = arith.constant 0 : index
    %29 = vector.load %arg4[%c0_25, %c0_26, %c0_27] : memref<7x128x128xf32, #tpu.memory_space<vmem>>, vector<1x128x128xf32>
    %30 = vector.shape_cast %29 : vector<1x128x128xf32> to vector<128x128xf32>
    %cst_28 = arith.constant dense<0.000000e+00> : vector<10x128xf32>
    %31 = tpu.matmul %28, %30, %cst_28 {dimension_numbers = #tpu.dot_dimension_numbers<[1], [0], [0], [1], [0, 0, 1, 1], [], []>} : vector<10x128xf32>, vector<128x128xf32>, vector<10x128xf32> -> vector<10x128xf32>
    %32 = arith.addf %27, %31 : vector<10x128xf32>
    %33 = vector.extract_strided_slice %24 {offsets = [1, 0], sizes = [10, 128], strides = [1, 1]} : vector<16x128xf32> to vector<10x128xf32>
    %c1_29 = arith.constant 1 : index
    %c0_30 = arith.constant 0 : index
    %c0_31 = arith.constant 0 : index
    %34 = vector.load %arg4[%c1_29, %c0_30, %c0_31] : memref<7x128x128xf32, #tpu.memory_space<vmem>>, vector<1x128x128xf32>
    %35 = vector.shape_cast %34 : vector<1x128x128xf32> to vector<128x128xf32>
    %cst_32 = arith.constant dense<0.000000e+00> : vector<10x128xf32>
    %36 = tpu.matmul %33, %35, %cst_32 {dimension_numbers = #tpu.dot_dimension_numbers<[1], [0], [0], [1], [0, 0, 1, 1], [], []>} : vector<10x128xf32>, vector<128x128xf32>, vector<10x128xf32> -> vector<10x128xf32>
    %37 = arith.addf %32, %36 : vector<10x128xf32>
    %38 = vector.extract_strided_slice %24 {offsets = [2, 0], sizes = [10, 128], strides = [1, 1]} : vector<16x128xf32> to vector<10x128xf32>
    %c2_33 = arith.constant 2 : index
    %c0_34 = arith.constant 0 : index
    %c0_35 = arith.constant 0 : index
    %39 = vector.load %arg4[%c2_33, %c0_34, %c0_35] : memref<7x128x128xf32, #tpu.memory_space<vmem>>, vector<1x128x128xf32>
    %40 = vector.shape_cast %39 : vector<1x128x128xf32> to vector<128x128xf32>
    %cst_36 = arith.constant dense<0.000000e+00> : vector<10x128xf32>
    %41 = tpu.matmul %38, %40, %cst_36 {dimension_numbers = #tpu.dot_dimension_numbers<[1], [0], [0], [1], [0, 0, 1, 1], [], []>} : vector<10x128xf32>, vector<128x128xf32>, vector<10x128xf32> -> vector<10x128xf32>
    %42 = arith.addf %37, %41 : vector<10x128xf32>
    %43 = vector.extract_strided_slice %24 {offsets = [3, 0], sizes = [10, 128], strides = [1, 1]} : vector<16x128xf32> to vector<10x128xf32>
    %c3 = arith.constant 3 : index
    %c0_37 = arith.constant 0 : index
    %c0_38 = arith.constant 0 : index
    %44 = vector.load %arg4[%c3, %c0_37, %c0_38] : memref<7x128x128xf32, #tpu.memory_space<vmem>>, vector<1x128x128xf32>
    %45 = vector.shape_cast %44 : vector<1x128x128xf32> to vector<128x128xf32>
    %cst_39 = arith.constant dense<0.000000e+00> : vector<10x128xf32>
    %46 = tpu.matmul %43, %45, %cst_39 {dimension_numbers = #tpu.dot_dimension_numbers<[1], [0], [0], [1], [0, 0, 1, 1], [], []>} : vector<10x128xf32>, vector<128x128xf32>, vector<10x128xf32> -> vector<10x128xf32>
    %47 = arith.addf %42, %46 : vector<10x128xf32>
    %48 = vector.extract_strided_slice %24 {offsets = [4, 0], sizes = [10, 128], strides = [1, 1]} : vector<16x128xf32> to vector<10x128xf32>
    %c4 = arith.constant 4 : index
    %c0_40 = arith.constant 0 : index
    %c0_41 = arith.constant 0 : index
    %49 = vector.load %arg4[%c4, %c0_40, %c0_41] : memref<7x128x128xf32, #tpu.memory_space<vmem>>, vector<1x128x128xf32>
    %50 = vector.shape_cast %49 : vector<1x128x128xf32> to vector<128x128xf32>
    %cst_42 = arith.constant dense<0.000000e+00> : vector<10x128xf32>
    %51 = tpu.matmul %48, %50, %cst_42 {dimension_numbers = #tpu.dot_dimension_numbers<[1], [0], [0], [1], [0, 0, 1, 1], [], []>} : vector<10x128xf32>, vector<128x128xf32>, vector<10x128xf32> -> vector<10x128xf32>
    %52 = arith.addf %47, %51 : vector<10x128xf32>
    %53 = vector.extract_strided_slice %24 {offsets = [5, 0], sizes = [10, 128], strides = [1, 1]} : vector<16x128xf32> to vector<10x128xf32>
    %c5 = arith.constant 5 : index
    %c0_43 = arith.constant 0 : index
    %c0_44 = arith.constant 0 : index
    %54 = vector.load %arg4[%c5, %c0_43, %c0_44] : memref<7x128x128xf32, #tpu.memory_space<vmem>>, vector<1x128x128xf32>
    %55 = vector.shape_cast %54 : vector<1x128x128xf32> to vector<128x128xf32>
    %cst_45 = arith.constant dense<0.000000e+00> : vector<10x128xf32>
    %56 = tpu.matmul %53, %55, %cst_45 {dimension_numbers = #tpu.dot_dimension_numbers<[1], [0], [0], [1], [0, 0, 1, 1], [], []>} : vector<10x128xf32>, vector<128x128xf32>, vector<10x128xf32> -> vector<10x128xf32>
    %57 = arith.addf %52, %56 : vector<10x128xf32>
    %58 = vector.extract_strided_slice %24 {offsets = [6, 0], sizes = [10, 128], strides = [1, 1]} : vector<16x128xf32> to vector<10x128xf32>
    %c6 = arith.constant 6 : index
    %c0_46 = arith.constant 0 : index
    %c0_47 = arith.constant 0 : index
    %59 = vector.load %arg4[%c6, %c0_46, %c0_47] : memref<7x128x128xf32, #tpu.memory_space<vmem>>, vector<1x128x128xf32>
    %60 = vector.shape_cast %59 : vector<1x128x128xf32> to vector<128x128xf32>
    %cst_48 = arith.constant dense<0.000000e+00> : vector<10x128xf32>
    %61 = tpu.matmul %58, %60, %cst_48 {dimension_numbers = #tpu.dot_dimension_numbers<[1], [0], [0], [1], [0, 0, 1, 1], [], []>} : vector<10x128xf32>, vector<128x128xf32>, vector<10x128xf32> -> vector<10x128xf32>
    %62 = arith.addf %57, %61 : vector<10x128xf32>
    %c0_49 = arith.constant 0 : index
    %c0_50 = arith.constant 0 : index
    %63 = vector.load %arg5[%c0_49, %c0_50] : memref<1x128xf32, #tpu.memory_space<vmem>>, vector<1x128xf32>
    %64 = vector.broadcast %63 : vector<1x128xf32> to vector<10x128xf32>
    %65 = arith.addf %62, %64 : vector<10x128xf32>
    %c3_51 = arith.constant 3 : index
    %c0_52 = arith.constant 0 : index
    %66 = vector.load %arg10[%c3_51, %c0_52] : memref<16x128xf32, #tpu.memory_space<vmem>>, vector<10x128xf32>
    tpu.vector_store %arg10[%c3_51, %c0_52], %65 {strides = array<i32>} : memref<16x128xf32, #tpu.memory_space<vmem>>, vector<10x128xf32>,
    %c0_53 = arith.constant 0 : index
    %c0_54 = arith.constant 0 : index
    %67 = vector.load %arg10[%c0_53, %c0_54] : memref<16x128xf32, #tpu.memory_space<vmem>>, vector<16x128xf32>
    %cst_55 = arith.constant 0.000000e+00 : f32
    %68 = vector.broadcast %cst_55 : f32 to vector<12x128xf32>
    %69 = vector.extract_strided_slice %24 {offsets = [0, 0], sizes = [12, 128], strides = [1, 1]} : vector<16x128xf32> to vector<12x128xf32>
    %c0_56 = arith.constant 0 : index
    %c0_57 = arith.constant 0 : index
    %c0_58 = arith.constant 0 : index
    %70 = vector.load %arg6[%c0_56, %c0_57, %c0_58] : memref<5x256x128xf32, #tpu.memory_space<vmem>>, vector<1x128x128xf32>
    %71 = vector.shape_cast %70 : vector<1x128x128xf32> to vector<128x128xf32>
    %cst_59 = arith.constant dense<0.000000e+00> : vector<12x128xf32>
    %72 = tpu.matmul %69, %71, %cst_59 {dimension_numbers = #tpu.dot_dimension_numbers<[1], [0], [0], [1], [0, 0, 1, 1], [], []>} : vector<12x128xf32>, vector<128x128xf32>, vector<12x128xf32> -> vector<12x128xf32>
    %73 = arith.addf %68, %72 : vector<12x128xf32>
    %74 = vector.extract_strided_slice %67 {offsets = [0, 0], sizes = [12, 128], strides = [1, 1]} : vector<16x128xf32> to vector<12x128xf32>
    %c0_60 = arith.constant 0 : index
    %c128 = arith.constant 128 : index
    %c0_61 = arith.constant 0 : index
    %75 = vector.load %arg6[%c0_60, %c128, %c0_61] : memref<5x256x128xf32, #tpu.memory_space<vmem>>, vector<1x128x128xf32>
    %76 = vector.shape_cast %75 : vector<1x128x128xf32> to vector<128x128xf32>
    %cst_62 = arith.constant dense<0.000000e+00> : vector<12x128xf32>
    %77 = tpu.matmul %74, %76, %cst_62 {dimension_numbers = #tpu.dot_dimension_numbers<[1], [0], [0], [1], [0, 0, 1, 1], [], []>} : vector<12x128xf32>, vector<128x128xf32>, vector<12x128xf32> -> vector<12x128xf32>
    %78 = arith.addf %73, %77 : vector<12x128xf32>
    %79 = vector.extract_strided_slice %24 {offsets = [1, 0], sizes = [12, 128], strides = [1, 1]} : vector<16x128xf32> to vector<12x128xf32>
    %c1_63 = arith.constant 1 : index
    %c0_64 = arith.constant 0 : index
    %c0_65 = arith.constant 0 : index
    %80 = vector.load %arg6[%c1_63, %c0_64, %c0_65] : memref<5x256x128xf32, #tpu.memory_space<vmem>>, vector<1x128x128xf32>
    %81 = vector.shape_cast %80 : vector<1x128x128xf32> to vector<128x128xf32>
    %cst_66 = arith.constant dense<0.000000e+00> : vector<12x128xf32>
    %82 = tpu.matmul %79, %81, %cst_66 {dimension_numbers = #tpu.dot_dimension_numbers<[1], [0], [0], [1], [0, 0, 1, 1], [], []>} : vector<12x128xf32>, vector<128x128xf32>, vector<12x128xf32> -> vector<12x128xf32>
    %83 = arith.addf %78, %82 : vector<12x128xf32>
    %84 = vector.extract_strided_slice %67 {offsets = [1, 0], sizes = [12, 128], strides = [1, 1]} : vector<16x128xf32> to vector<12x128xf32>
    %c1_67 = arith.constant 1 : index
    %c128_68 = arith.constant 128 : index
    %c0_69 = arith.constant 0 : index
    %85 = vector.load %arg6[%c1_67, %c128_68, %c0_69] : memref<5x256x128xf32, #tpu.memory_space<vmem>>, vector<1x128x128xf32>
    %86 = vector.shape_cast %85 : vector<1x128x128xf32> to vector<128x128xf32>
    %cst_70 = arith.constant dense<0.000000e+00> : vector<12x128xf32>
    %87 = tpu.matmul %84, %86, %cst_70 {dimension_numbers = #tpu.dot_dimension_numbers<[1], [0], [0], [1], [0, 0, 1, 1], [], []>} : vector<12x128xf32>, vector<128x128xf32>, vector<12x128xf32> -> vector<12x128xf32>
    %88 = arith.addf %83, %87 : vector<12x128xf32>
    %89 = vector.extract_strided_slice %24 {offsets = [2, 0], sizes = [12, 128], strides = [1, 1]} : vector<16x128xf32> to vector<12x128xf32>
    %c2_71 = arith.constant 2 : index
    %c0_72 = arith.constant 0 : index
    %c0_73 = arith.constant 0 : index
    %90 = vector.load %arg6[%c2_71, %c0_72, %c0_73] : memref<5x256x128xf32, #tpu.memory_space<vmem>>, vector<1x128x128xf32>
    %91 = vector.shape_cast %90 : vector<1x128x128xf32> to vector<128x128xf32>
    %cst_74 = arith.constant dense<0.000000e+00> : vector<12x128xf32>
    %92 = tpu.matmul %89, %91, %cst_74 {dimension_numbers = #tpu.dot_dimension_numbers<[1], [0], [0], [1], [0, 0, 1, 1], [], []>} : vector<12x128xf32>, vector<128x128xf32>, vector<12x128xf32> -> vector<12x128xf32>
    %93 = arith.addf %88, %92 : vector<12x128xf32>
    %94 = vector.extract_strided_slice %67 {offsets = [2, 0], sizes = [12, 128], strides = [1, 1]} : vector<16x128xf32> to vector<12x128xf32>
    %c2_75 = arith.constant 2 : index
    %c128_76 = arith.constant 128 : index
    %c0_77 = arith.constant 0 : index
    %95 = vector.load %arg6[%c2_75, %c128_76, %c0_77] : memref<5x256x128xf32, #tpu.memory_space<vmem>>, vector<1x128x128xf32>
    %96 = vector.shape_cast %95 : vector<1x128x128xf32> to vector<128x128xf32>
    %cst_78 = arith.constant dense<0.000000e+00> : vector<12x128xf32>
    %97 = tpu.matmul %94, %96, %cst_78 {dimension_numbers = #tpu.dot_dimension_numbers<[1], [0], [0], [1], [0, 0, 1, 1], [], []>} : vector<12x128xf32>, vector<128x128xf32>, vector<12x128xf32> -> vector<12x128xf32>
    %98 = arith.addf %93, %97 : vector<12x128xf32>
    %99 = vector.extract_strided_slice %24 {offsets = [3, 0], sizes = [12, 128], strides = [1, 1]} : vector<16x128xf32> to vector<12x128xf32>
    %c3_79 = arith.constant 3 : index
    %c0_80 = arith.constant 0 : index
    %c0_81 = arith.constant 0 : index
    %100 = vector.load %arg6[%c3_79, %c0_80, %c0_81] : memref<5x256x128xf32, #tpu.memory_space<vmem>>, vector<1x128x128xf32>
    %101 = vector.shape_cast %100 : vector<1x128x128xf32> to vector<128x128xf32>
    %cst_82 = arith.constant dense<0.000000e+00> : vector<12x128xf32>
    %102 = tpu.matmul %99, %101, %cst_82 {dimension_numbers = #tpu.dot_dimension_numbers<[1], [0], [0], [1], [0, 0, 1, 1], [], []>} : vector<12x128xf32>, vector<128x128xf32>, vector<12x128xf32> -> vector<12x128xf32>
    %103 = arith.addf %98, %102 : vector<12x128xf32>
    %104 = vector.extract_strided_slice %67 {offsets = [3, 0], sizes = [12, 128], strides = [1, 1]} : vector<16x128xf32> to vector<12x128xf32>
    %c3_83 = arith.constant 3 : index
    %c128_84 = arith.constant 128 : index
    %c0_85 = arith.constant 0 : index
    %105 = vector.load %arg6[%c3_83, %c128_84, %c0_85] : memref<5x256x128xf32, #tpu.memory_space<vmem>>, vector<1x128x128xf32>
    %106 = vector.shape_cast %105 : vector<1x128x128xf32> to vector<128x128xf32>
    %cst_86 = arith.constant dense<0.000000e+00> : vector<12x128xf32>
    %107 = tpu.matmul %104, %106, %cst_86 {dimension_numbers = #tpu.dot_dimension_numbers<[1], [0], [0], [1], [0, 0, 1, 1], [], []>} : vector<12x128xf32>, vector<128x128xf32>, vector<12x128xf32> -> vector<12x128xf32>
    %108 = arith.addf %103, %107 : vector<12x128xf32>
    %109 = vector.extract_strided_slice %24 {offsets = [4, 0], sizes = [12, 128], strides = [1, 1]} : vector<16x128xf32> to vector<12x128xf32>
    %c4_87 = arith.constant 4 : index
    %c0_88 = arith.constant 0 : index
    %c0_89 = arith.constant 0 : index
    %110 = vector.load %arg6[%c4_87, %c0_88, %c0_89] : memref<5x256x128xf32, #tpu.memory_space<vmem>>, vector<1x128x128xf32>
    %111 = vector.shape_cast %110 : vector<1x128x128xf32> to vector<128x128xf32>
    %cst_90 = arith.constant dense<0.000000e+00> : vector<12x128xf32>
    %112 = tpu.matmul %109, %111, %cst_90 {dimension_numbers = #tpu.dot_dimension_numbers<[1], [0], [0], [1], [0, 0, 1, 1], [], []>} : vector<12x128xf32>, vector<128x128xf32>, vector<12x128xf32> -> vector<12x128xf32>
    %113 = arith.addf %108, %112 : vector<12x128xf32>
    %114 = vector.extract_strided_slice %67 {offsets = [4, 0], sizes = [12, 128], strides = [1, 1]} : vector<16x128xf32> to vector<12x128xf32>
    %c4_91 = arith.constant 4 : index
    %c128_92 = arith.constant 128 : index
    %c0_93 = arith.constant 0 : index
    %115 = vector.load %arg6[%c4_91, %c128_92, %c0_93] : memref<5x256x128xf32, #tpu.memory_space<vmem>>, vector<1x128x128xf32>
    %116 = vector.shape_cast %115 : vector<1x128x128xf32> to vector<128x128xf32>
    %cst_94 = arith.constant dense<0.000000e+00> : vector<12x128xf32>
    %117 = tpu.matmul %114, %116, %cst_94 {dimension_numbers = #tpu.dot_dimension_numbers<[1], [0], [0], [1], [0, 0, 1, 1], [], []>} : vector<12x128xf32>, vector<128x128xf32>, vector<12x128xf32> -> vector<12x128xf32>
    %118 = arith.addf %113, %117 : vector<12x128xf32>
    %c0_95 = arith.constant 0 : index
    %c0_96 = arith.constant 0 : index
    %119 = vector.load %arg7[%c0_95, %c0_96] : memref<1x128xf32, #tpu.memory_space<vmem>>, vector<1x128xf32>
    %120 = vector.broadcast %119 : vector<1x128xf32> to vector<12x128xf32>
    %121 = arith.addf %118, %120 : vector<12x128xf32>
    %cst_97 = arith.constant 0.000000e+00 : f32
    %122 = vector.broadcast %cst_97 : f32 to vector<12x128xf32>
    %123 = vector.extract_strided_slice %1 {offsets = [0, 0], sizes = [12, 256], strides = [1, 1]} : vector<16x256xf32> to vector<12x256xf32>
    %c0_98 = arith.constant 0 : index
    %c0_99 = arith.constant 0 : index
    %c0_100 = arith.constant 0 : index
    %124 = vector.load %arg6[%c0_98, %c0_99, %c0_100] : memref<5x256x128xf32, #tpu.memory_space<vmem>>, vector<1x256x128xf32>
    %125 = vector.shape_cast %124 : vector<1x256x128xf32> to vector<256x128xf32>
    %cst_101 = arith.constant dense<0.000000e+00> : vector<12x128xf32>
    %126 = tpu.matmul %123, %125, %cst_101 {dimension_numbers = #tpu.dot_dimension_numbers<[1], [0], [0], [1], [0, 0, 1, 1], [], []>} : vector<12x256xf32>, vector<256x128xf32>, vector<12x128xf32> -> vector<12x128xf32>
    %127 = arith.addf %122, %126 : vector<12x128xf32>
    %128 = vector.extract_strided_slice %1 {offsets = [1, 0], sizes = [12, 256], strides = [1, 1]} : vector<16x256xf32> to vector<12x256xf32>
    %c1_102 = arith.constant 1 : index
    %c0_103 = arith.constant 0 : index
    %c0_104 = arith.constant 0 : index
    %129 = vector.load %arg6[%c1_102, %c0_103, %c0_104] : memref<5x256x128xf32, #tpu.memory_space<vmem>>, vector<1x256x128xf32>
    %130 = vector.shape_cast %129 : vector<1x256x128xf32> to vector<256x128xf32>
    %cst_105 = arith.constant dense<0.000000e+00> : vector<12x128xf32>
    %131 = tpu.matmul %128, %130, %cst_105 {dimension_numbers = #tpu.dot_dimension_numbers<[1], [0], [0], [1], [0, 0, 1, 1], [], []>} : vector<12x256xf32>, vector<256x128xf32>, vector<12x128xf32> -> vector<12x128xf32>
    %132 = arith.addf %127, %131 : vector<12x128xf32>
    %133 = vector.extract_strided_slice %1 {offsets = [2, 0], sizes = [12, 256], strides = [1, 1]} : vector<16x256xf32> to vector<12x256xf32>
    %c2_106 = arith.constant 2 : index
    %c0_107 = arith.constant 0 : index
    %c0_108 = arith.constant 0 : index
    %134 = vector.load %arg6[%c2_106, %c0_107, %c0_108] : memref<5x256x128xf32, #tpu.memory_space<vmem>>, vector<1x256x128xf32>
    %135 = vector.shape_cast %134 : vector<1x256x128xf32> to vector<256x128xf32>
    %cst_109 = arith.constant dense<0.000000e+00> : vector<12x128xf32>
    %136 = tpu.matmul %133, %135, %cst_109 {dimension_numbers = #tpu.dot_dimension_numbers<[1], [0], [0], [1], [0, 0, 1, 1], [], []>} : vector<12x256xf32>, vector<256x128xf32>, vector<12x128xf32> -> vector<12x128xf32>
    %137 = arith.addf %132, %136 : vector<12x128xf32>
    %138 = vector.extract_strided_slice %1 {offsets = [3, 0], sizes = [12, 256], strides = [1, 1]} : vector<16x256xf32> to vector<12x256xf32>
    %c3_110 = arith.constant 3 : index
    %c0_111 = arith.constant 0 : index
    %c0_112 = arith.constant 0 : index
    %139 = vector.load %arg6[%c3_110, %c0_111, %c0_112] : memref<5x256x128xf32, #tpu.memory_space<vmem>>, vector<1x256x128xf32>
    %140 = vector.shape_cast %139 : vector<1x256x128xf32> to vector<256x128xf32>
    %cst_113 = arith.constant dense<0.000000e+00> : vector<12x128xf32>
    %141 = tpu.matmul %138, %140, %cst_113 {dimension_numbers = #tpu.dot_dimension_numbers<[1], [0], [0], [1], [0, 0, 1, 1], [], []>} : vector<12x256xf32>, vector<256x128xf32>, vector<12x128xf32> -> vector<12x128xf32>
    %142 = arith.addf %137, %141 : vector<12x128xf32>
    %143 = vector.extract_strided_slice %1 {offsets = [4, 0], sizes = [12, 256], strides = [1, 1]} : vector<16x256xf32> to vector<12x256xf32>
    %c4_114 = arith.constant 4 : index
    %c0_115 = arith.constant 0 : index
    %c0_116 = arith.constant 0 : index
    %144 = vector.load %arg6[%c4_114, %c0_115, %c0_116] : memref<5x256x128xf32, #tpu.memory_space<vmem>>, vector<1x256x128xf32>
    %145 = vector.shape_cast %144 : vector<1x256x128xf32> to vector<256x128xf32>
    %cst_117 = arith.constant dense<0.000000e+00> : vector<12x128xf32>
    %146 = tpu.matmul %143, %145, %cst_117 {dimension_numbers = #tpu.dot_dimension_numbers<[1], [0], [0], [1], [0, 0, 1, 1], [], []>} : vector<12x256xf32>, vector<256x128xf32>, vector<12x128xf32> -> vector<12x128xf32>
    %147 = arith.addf %142, %146 : vector<12x128xf32>
    %c0_118 = arith.constant 0 : index
    %c0_119 = arith.constant 0 : index
    %148 = vector.load %arg7[%c0_118, %c0_119] : memref<1x128xf32, #tpu.memory_space<vmem>>, vector<1x128xf32>
    %149 = vector.broadcast %148 : vector<1x128xf32> to vector<12x128xf32>
    %150 = arith.addf %147, %149 : vector<12x128xf32>
    %cst_120 = arith.constant 0.000000e+00 : f32
    %151 = vector.broadcast %cst_120 : f32 to vector<1x16x512xf32>
    %c0_121 = arith.constant 0 : index
    %c0_122 = arith.constant 0 : index
    %c0_123 = arith.constant 0 : index
    %152 = vector.load %arg8[%c0_121, %c0_122, %c0_123] : memref<1x16x512xf32, #tpu.memory_space<vmem>>, vector<1x16x512xf32>
    tpu.vector_store %arg8[%c0_121, %c0_122, %c0_123], %151 {strides = array<i32>} : memref<1x16x512xf32, #tpu.memory_space<vmem>>, vector<1x16x512xf32>,
    %c0_124 = arith.constant 0 : index
    %c2_125 = arith.constant 2 : index
    %c0_126 = arith.constant 0 : index
    %153 = vector.load %arg8[%c0_124, %c2_125, %c0_126] : memref<1x16x512xf32, #tpu.memory_space<vmem>>, vector<1x12x128xf32>
    %154 = vector.shape_cast %153 : vector<1x12x128xf32> to vector<12x128xf32>
    %155 = vector.shape_cast %121 : vector<12x128xf32> to vector<1x12x128xf32>
    tpu.vector_store %arg8[%c0_124, %c2_125, %c0_126], %155 {strides = array<i32>} : memref<1x16x512xf32, #tpu.memory_space<vmem>>, vector<1x12x128xf32>,
    %c0_127 = arith.constant 0 : index
    %c2_128 = arith.constant 2 : index
    %c128_129 = arith.constant 128 : index
    %156 = vector.load %arg8[%c0_127, %c2_128, %c128_129] : memref<1x16x512xf32, #tpu.memory_space<vmem>>, vector<1x12x128xf32>
    %157 = vector.shape_cast %156 : vector<1x12x128xf32> to vector<12x128xf32>
    %158 = vector.shape_cast %150 : vector<12x128xf32> to vector<1x12x128xf32>
    tpu.vector_store %arg8[%c0_127, %c2_128, %c128_129], %158 {strides = array<i32>} : memref<1x16x512xf32, #tpu.memory_space<vmem>>, vector<1x12x128xf32>,
    %c0_130 = arith.constant 0 : index
    %c0_131 = arith.constant 0 : index
    %c256 = arith.constant 256 : index
    %159 = vector.load %arg8[%c0_130, %c0_131, %c256] : memref<1x16x512xf32, #tpu.memory_space<vmem>>, vector<1x16x128xf32>
    %160 = vector.shape_cast %159 : vector<1x16x128xf32> to vector<16x128xf32>
    %161 = vector.shape_cast %24 : vector<16x128xf32> to vector<1x16x128xf32>
    tpu.vector_store %arg8[%c0_130, %c0_131, %c256], %161 {strides = array<i32>} : memref<1x16x512xf32, #tpu.memory_space<vmem>>, vector<1x16x128xf32>,
    %c0_132 = arith.constant 0 : index
    %c0_133 = arith.constant 0 : index
    %c384 = arith.constant 384 : index
    %162 = vector.load %arg8[%c0_132, %c0_133, %c384] : memref<1x16x512xf32, #tpu.memory_space<vmem>>, vector<1x16x128xf32>
    %163 = vector.shape_cast %162 : vector<1x16x128xf32> to vector<16x128xf32>
    %164 = vector.shape_cast %67 : vector<16x128xf32> to vector<1x16x128xf32>
    tpu.vector_store %arg8[%c0_132, %c0_133, %c384], %164 {strides = array<i32>} : memref<1x16x512xf32, #tpu.memory_space<vmem>>, vector<1x16x128xf32>,
    return
  }
  func.func @transform_0(%arg0: i32) -> (i32, i32, i32) {
    %c0_i32 = arith.constant 0 : i32
    %c0_i32_0 = arith.constant 0 : i32
    %c0_i32_1 = arith.constant 0 : i32
    return %arg0, %c0_i32, %c0_i32_0 : i32, i32, i32
  }
  func.func @transform_1(%arg0: i32) -> (i32, i32, i32) {
    %c0_i32 = arith.constant 0 : i32
    %c0_i32_0 = arith.constant 0 : i32
    %c0_i32_1 = arith.constant 0 : i32
    %c0_i32_2 = arith.constant 0 : i32
    return %c0_i32, %c0_i32_0, %c0_i32_1 : i32, i32, i32
  }
  func.func @transform_2(%arg0: i32) -> (i32, i32) {
    %c0_i32 = arith.constant 0 : i32
    %c0_i32_0 = arith.constant 0 : i32
    %c0_i32_1 = arith.constant 0 : i32
    return %c0_i32, %c0_i32_0 : i32, i32
  }
  func.func @transform_3(%arg0: i32) -> (i32, i32, i32) {
    %c0_i32 = arith.constant 0 : i32
    %c0_i32_0 = arith.constant 0 : i32
    %c0_i32_1 = arith.constant 0 : i32
    %c0_i32_2 = arith.constant 0 : i32
    return %c0_i32, %c0_i32_0, %c0_i32_1 : i32, i32, i32
  }
  func.func @transform_4(%arg0: i32) -> (i32, i32) {
    %c0_i32 = arith.constant 0 : i32
    %c0_i32_0 = arith.constant 0 : i32
    %c0_i32_1 = arith.constant 0 : i32
    return %c0_i32, %c0_i32_0 : i32, i32
  }
  func.func @transform_5(%arg0: i32) -> (i32, i32, i32) {
    %c0_i32 = arith.constant 0 : i32
    %c0_i32_0 = arith.constant 0 : i32
    %c0_i32_1 = arith.constant 0 : i32
    %c0_i32_2 = arith.constant 0 : i32
    return %c0_i32, %c0_i32_0, %c0_i32_1 : i32, i32, i32
  }
  func.func @transform_6(%arg0: i32) -> (i32, i32) {
    %c0_i32 = arith.constant 0 : i32
    %c0_i32_0 = arith.constant 0 : i32
    %c0_i32_1 = arith.constant 0 : i32
    return %c0_i32, %c0_i32_0 : i32, i32
  }
  func.func @transform_7(%arg0: i32) -> (i32, i32, i32) {
    %c0_i32 = arith.constant 0 : i32
    %c0_i32_0 = arith.constant 0 : i32
    %c0_i32_1 = arith.constant 0 : i32
    return %arg0, %c0_i32, %c0_i32_0 : i32, i32, i32
  }
}

</mosaic_0001>

<bundles_post_ra>
// kernel: tpu_custom_call.1
= control target key start
LH: loop header
LB: loop body
LE: loop exit
PB: predicated region body
PF: predicated region fallthrough
CT: control target
= control target key end

     0   :  { %12 = vsyncpa [#allocation5], 0  ;;  %s6333_s0 = inlined_call_operand.hbm [shape: f32[2,16,256], index: 0, kind: input, shape index: {}]   ;;  %s6334_s1 = inlined_call_operand.hbm [shape: f32[3,256,128], index: 1, kind: input, shape index: {}]   ;;  %s6335_s2 = inlined_call_operand.vmem [shape: f32[1,128], index: 2, kind: input, shape index: {}]   ;;  %s6336_s3 = inlined_call_operand.hbm [shape: f32[7,128,128], index: 3, kind: input, shape index: {}]   ;;  %s6337_s4 = inlined_call_operand.vmem [shape: f32[1,128], index: 4, kind: input, shape index: {}]   ;;  %s6338_s5 = inlined_call_operand.hbm [shape: f32[5,256,128], index: 5, kind: input, shape index: {}]   ;;  %s6339_s6 = inlined_call_operand.vmem [shape: f32[1,128], index: 6, kind: input, shape index: {}]   ;;  %s6340_s7 = inlined_call_operand.hbm [shape: f32[2,16,512], index: 7, kind: output, shape index: {}]  }
   0x1   :  { %14 = vsyncpa [#allocation5 + $0x1], 0 }
   0x2   :  { %15 = vsyncpa [#allocation8], 0 }
   0x3   :  { %16 = vsyncpa [#allocation11], 0 }
   0x4   :  { %17 = vsyncpa [#allocation6], 0 }
   0x5   :  { %19 = vsyncpa [#allocation6 + $0x1], 0  ;;  %s5412_s24 = smov 0   ;;  %s5414_s25 = smov 0  }
   0x6   :  { %s5416_s26 = smov 0   ;;  %s5418_s27 = smov 0  }
   0x7 LB: > { %s5433_s28 = sadd.s32 4294967295, %s5358_s27   ;;  %s3005_s29 = sadd.s32 4294967294, %s5358_s27   ;;  %s5358_s27 = sphi %s5418_s27, %s6396_s27   ;;  %s5354_s26 = sphi %s5416_s26, %s6395_s26   ;;  %s5350_s25 = sphi %s5414_s25, %s6394_s25   ;;  %s5346_s24 = sphi %s5412_s24, %s6393_s24  }
   0x8   : > { %p45_p0 = scmp.ne.s32.totalorder %s5350_s25, %s5346_s24  ;;  %p6341_p1 = scmp.eq.s32.totalorder %s5433_s28, 0 }
   0x9   : > { %p201_p3 = scmp.eq.s32.totalorder %s3005_s29, 1  ;;  %p3006_p5 = scmp.ge.s32.totalorder %s5358_s27, 1 }
   0xa   : > { %p5442_p4 = por %p6341_p1, %p45_p0  ;;  %p208_p7 = scmp.lt.s32.totalorder %s5358_s27, 3 }
   0xb   : > { %p5447_p6 = por %p201_p3, %p45_p0  ;;  %s5360_s10 = smov [#allocation7]  }
   0xc   : > { %s6357_s30 = scalar_select %p5442_p4, 1, 0 }
   0xd   : > { %s6358_s8 = scalar_select %p5447_p6, 1, 0 }
   0xe   : > { %p5452_p8 = pnand %p3006_p5, %p208_p7  ;;  %s220_s11 = sshll.u32 %s5360_s10, 4  ;;  %s5456_s11 = int_to_ptr.vmem [resolvable:$true] %s220_s11 }
   0xf   : > { %6359 = sst [smem:[#allocation17_spill]] %s6358_s8  ;;  %s5361_s13 = smov [#allocation9]  }
  0x10   : > { %s6360_s9 = scalar_select %p5452_p8, 1, 0 }
  0x11   : > { %p5097_p9 = pneg %p5452_p8  ;;  %s236_s14 = sshll.u32 %s5361_s13, 4  ;;  %s5467_s14 = int_to_ptr.vmem [resolvable:$true] %s236_s14 }
  0x12   : > { %s5362_s15 = smov [#allocation10]   ;;  %s5170_s19 = scalar_lea.hbm %s6334_s1, 12288 }
  0x13   : > { %p5463_p11 = pnand %p5097_p9, %p6341_p1  ;;  %s5469_s16 = sshll.u32 %s5362_s15, 4  ;;  %s253_s16 = int_to_ptr.vmem [resolvable:$true] %s5469_s16 }
  0x14   : > { %p5171_p12 = scmp.ne.s32.totalorder %s6334_s1, %s5170_s19  ;;  %p5177_p5 = scmp.lt.u32.totalorder %s5170_s19, %s6334_s1 }
  0x15   : > { %p5479_p13 = pneg %p5463_p11 }
  0x17   : > { %p5173_p0 = pnand %p5479_p13, %p5171_p12 }
  0x19   : > { %p5174_p3 = pneg %p5173_p0 }
  0x1b   : > { %p5179_p7 = pnand %p5177_p5, %p5174_p3 }
  0x1d   : > { %5182 = shalt.err (!%p5179_p7)
}
  0x1e   : > { %s5183_s10 = scalar_lea.vmem %s5456_s11, 12288  ;;  %p5191_p2 = scmp.lt.s32.totalorder %s5456_s11, %s5456_s11 }
  0x1f   : > { %p5184_p9 = scmp.ne.s32.totalorder %s5456_s11, %s5183_s10  ;;  %p5192_p6 = scmp.lt.s32.totalorder %s5183_s10, %s5183_s10 }
  0x21   : > { %p5186_p10 = pnand %p5184_p9, %p5479_p13  ;;  %p5193_p12 = por %p5192_p6, %p5191_p2 }
  0x23   : > { %p5187_p1 = pneg %p5186_p10 }
  0x25   : > { %p5194_p0 = pnand %p5193_p12, %p5187_p1 }
  0x27   : > { %5197 = shalt.err (!%p5194_p0)
}
  0x28   : > { %s5363_s13 = smov 128   ;;  %s5364_s15 = smov 8  }
  0x29   : > { %5100 = dma.hbm_to_vmem [thread:$0]  (!%p5463_p11), %s6334_s1, 12288, %s5456_s11, [#allocation8], %s5363_s13, %s5363_s13, %s5364_s15  }
  0x2a   : > { %s5198_s21 = scalar_lea.hbm %s6336_s3, 14336 }
  0x2b   : > { %p5199_p1 = scmp.ne.s32.totalorder %s6336_s3, %s5198_s21  ;;  %p5205_p10 = scmp.lt.u32.totalorder %s5198_s21, %s6336_s3 }
  0x2d   : > { %p5201_p2 = pnand %p5199_p1, %p5479_p13 }
  0x2f   : > { %p5202_p6 = pneg %p5201_p2 }
  0x31   : > { %p5207_p3 = pnand %p5205_p10, %p5202_p6 }
  0x33   : > { %5210 = shalt.err (!%p5207_p3)
}
  0x34   : > { %s5211_s11 = scalar_lea.vmem %s5467_s14, 14336  ;;  %p5219_p12 = scmp.lt.s32.totalorder %s5467_s14, %s5467_s14 }
  0x35   : > { %p5212_p5 = scmp.ne.s32.totalorder %s5467_s14, %s5211_s11  ;;  %p5220_p0 = scmp.lt.s32.totalorder %s5211_s11, %s5211_s11 }
  0x37   : > { %p5214_p7 = pnand %p5212_p5, %p5479_p13  ;;  %p5221_p1 = por %p5220_p0, %p5219_p12 }
  0x39   : > { %p5215_p9 = pneg %p5214_p7 }
  0x3b   : > { %p5222_p2 = pnand %p5221_p1, %p5215_p9 }
  0x3d   : > { %5225 = shalt.err (!%p5222_p2)
}
  0x3e   : > { %5103 = dma.hbm_to_vmem [thread:$0]  (!%p5463_p11), %s6336_s3, 14336, %s5467_s14, [#allocation8], %s5363_s13, %s5363_s13, %s5364_s15  }
  0x3f   : > { %s5226_s20 = scalar_lea.hbm %s6338_s5, 20480 }
  0x40   : > { %p5227_p6 = scmp.ne.s32.totalorder %s6338_s5, %s5226_s20  ;;  %p5233_p5 = scmp.lt.u32.totalorder %s5226_s20, %s6338_s5 }
  0x42   : > { %p5229_p10 = pnand %p5227_p6, %p5479_p13 }
  0x44   : > { %p5230_p3 = pneg %p5229_p10 }
  0x46   : > { %p5235_p7 = pnand %p5233_p5, %p5230_p3 }
  0x48   : > { %5238 = shalt.err (!%p5235_p7)
}
  0x49   : > { %s5239_s11 = scalar_lea.vmem %s253_s16, 20480  ;;  %p5247_p1 = scmp.lt.s32.totalorder %s253_s16, %s253_s16 }
  0x4a   : > { %p5240_p9 = scmp.ne.s32.totalorder %s253_s16, %s5239_s11  ;;  %p5248_p2 = scmp.lt.s32.totalorder %s5239_s11, %s5239_s11 }
  0x4c   : > { %p5242_p12 = pnand %p5240_p9, %p5479_p13  ;;  %p5249_p4 = por %p5248_p2, %p5247_p1 }
  0x4e   : > { %p5243_p0 = pneg %p5242_p12 }
  0x50   : > { %p5250_p8 = pnand %p5249_p4, %p5243_p0 }
  0x52   : > { %5253 = shalt.err (!%p5250_p8)
}
  0x53   : > { %5106 = dma.hbm_to_vmem [thread:$0]  (!%p5463_p11), %s6338_s5, 20480, %s253_s16, [#allocation11], %s5363_s13, %s5363_s13, %s5364_s15  }
  0x54   : > { %s5552_s22 = sadd.s32 1, %s5358_s27   ;;  %s32_s17 = sadd.s32 1, %s5354_s26 }
  0x55   : > { %s29_s12 = ssub.s32 %s5358_s27, %s5552_s22  ;;  %p39_p8 = scmp.ne.s32.totalorder %s5354_s26, %s5350_s25 }
  0x56   : > { %p30_p4 = scmp.eq.s32.totalorder %s29_s12, 0  ;;  %p40_p13 = scmp.eq.s32.totalorder %s5358_s27, 0 }
  0x57   : > { %p5118_p6 = scmp.lt.s32.totalorder %s5358_s27, 2  ;;  %p6363_p3 = scmp.eq.s32.totalorder %s5433_s28, 1 }
  0x58   : > { %s5562_s18 = scalar_select %p30_p4, %s5354_s26, %s32_s17  }
  0x59   : > { %p41_p10 = por %p40_p13, %p39_p8  ;;  %p5566_p5 = por %p6363_p3, %p39_p8 }
  0x5a   : > { %s269_s20 = sand.u32 1, %s5354_s26   ;;  %s3028_s21 = sshll.u32 %s5358_s27, 9 }
  0x5b   : > { %s3011_s16 = sshll.u32 %s269_s20, 5  ;;  %s5575_s23 = scalar_lea.hbm %s6333_s0, %s3028_s21 }
  0x5c   : > { %s273_s29 = scalar_lea.vmem [#allocation4], %s3011_s16  ;;  %p5577_p11 = pnand %p5118_p6, %p41_p10 }
  0x5d   : > { %s280_s10 = sshll.u32 %s273_s29, 4  ;;  %s5583_s14 = scalar_lea.sflag [#allocation5], %s269_s20  ;;  %s5581_s10 = int_to_ptr.vmem [resolvable:$true] %s280_s10 }
  0x5e   : > { %s5254_s8 = scalar_lea.hbm %s5575_s23, 512  ;;  %p5256_p9 = pneg %p5577_p11 }
  0x5f   : > { %p5255_p7 = scmp.ne.s32.totalorder %s5575_s23, %s5254_s8  ;;  %s5259_s21 = scalar_lea.hbm %s6333_s0, 1024 }
  0x60   : > { %p5260_p1 = scmp.lt.u32.totalorder %s5575_s23, %s6333_s0  ;;  %p5261_p2 = scmp.lt.u32.totalorder %s5259_s21, %s5254_s8 }
  0x61   : > { %p5257_p12 = pnand %p5256_p9, %p5255_p7  ;;  %p5263_p8 = scmp.lt.u32.totalorder %s5254_s8, %s5575_s23 }
  0x62   : > { %p5262_p4 = por %p5261_p2, %p5260_p1 }
  0x63   : > { %p5258_p0 = pneg %p5257_p12 }
  0x64   : > { %p5264_p13 = por %p5263_p8, %p5262_p4 }
  0x66   : > { %p5265_p6 = pnand %p5264_p13, %p5258_p0 }
  0x68   : > { %5268 = shalt.err (!%p5265_p6)
}
  0x69   : > { %s5269_s20 = scalar_lea.vmem %s5581_s10, 512  ;;  %s5365_s15 = smov [#allocation4]  }
  0x6a   : > { %p5270_p10 = scmp.ne.s32.totalorder %s5581_s10, %s5269_s20  ;;  %s5274_s29 = sshll.u32 %s5365_s15, 4  ;;  %s5275_s29 = int_to_ptr.vmem [resolvable:$false] %s5274_s29 }
  0x6b   : > { %s5276_s12 = scalar_lea.vmem %s5275_s29, 1024  ;;  %p5277_p12 = scmp.lt.s32.totalorder %s5581_s10, %s5275_s29 }
  0x6c   : > { %p5272_p3 = pnand %p5270_p10, %p5256_p9  ;;  %p5278_p1 = scmp.lt.s32.totalorder %s5276_s12, %s5269_s20 }
  0x6e   : > { %p5273_p7 = pneg %p5272_p3  ;;  %p5279_p2 = por %p5278_p1, %p5277_p12 }
  0x70   : > { %p5280_p4 = pnand %p5279_p2, %p5273_p7 }
  0x72   : > { %5283 = shalt.err (!%p5280_p4)
}
  0x73   : > { %s5366_s8 = smov 256   ;;  %s5367_s17 = smov 16  }
  0x74   : > { %5110 = dma.hbm_to_vmem [thread:$0]  (!%p5577_p11), %s5575_s23, 512, %s5581_s10, %s5583_s14, %s5366_s8, %s5366_s8, %s5367_s17  }
  0x75   : > { %p6366_p9 = scmp.ne.s32.totalorder %s6360_s9, 0 }
  0x77   : > { %292 = sbr.rel (%p6366_p9) target bundleno = 1413 (0x585), region = 48 }
  0x7e   : > { %s5614_s21 = sand.u32 1, %s5350_s25   ;;  %p6367_p0 = scmp.ne.s32.totalorder %s6357_s30, 0 }
  0x7f   : > { %s3015_s16 = sshll.u32 %s5614_s21, 5  ;;  %s295_s13 = scalar_lea.sflag [#allocation5], %s5614_s21 }
  0x80   : > { %s5618_s20 = scalar_lea.vmem [#allocation4], %s3015_s16 }
  0x81   : > { %5329 = dma.done.wait (%p6367_p0), %s295_s13, 512  }
  0x82   : > { %5331 = vsyncadd (%p6367_p0), %s295_s13, 4294966784  ;;  %p6368_p11 = scmp.eq.s32.totalorder %s5433_s28, 0 }
  0x84   : > { %5333 = dma.done.wait (%p6368_p11), [#allocation8], 26624   ;;  %p6369_p8 = pmov %p6368_p11 }
  0x86   : > { %5335 = vsyncadd (%p6369_p8), [#allocation8], 4294940672  ;;  %p6370_p13 = pmov %p6369_p8 }
  0x87   : > { %p6371_p6 = pmov %p6369_p8 }
  0x88   : > { %5337 = dma.done.wait (%p6370_p13), [#allocation11], 20480  }
  0x89   : > { %5339 = vsyncadd (%p6371_p6), [#allocation11], 4294946816  ;;  %v396_v0 = vld [vmem:[#allocation7 + $0x180] sm:$0xff]  ;;  %v397_v1 = vld [vmem:[#allocation7 + $0x188] sm:$0xff]  ;;  %vm416_vm0 = vcmask 1046528   ;;  %vm610_vm1 = vcmask 1045504  }
  0x8a   : > { %v363_v2 = vld [vmem:[#allocation7 + $0x80] sm:$0xff]  ;;  %v4235_v3 = vpack.c.bf16 %v397_v1, %v396_v0  ;;  %v364_v4 = vld [vmem:[#allocation7 + $0x88] sm:$0xff]  ;;  %v398_v11 = vld [vmem:[#allocation7 + $0x190] sm:$0xff]  ;;  %s3019_s30 = sshll.u32 %s5614_s21, 6  ;;  %vm1019_vm2 = vcmask 1044480   ;;  %vm1119_vm3 = vcmask 1043456  }
  0x8b   : > { %v380_v5 = vld [vmem:[#allocation7 + $0x100] sm:$0xff]  ;;  %v381_v6 = vld [vmem:[#allocation7 + $0x108] sm:$0xff]  ;;  %v4267_v7 = vpack.c.bf16 %v364_v4, %v363_v2  ;;  %v399_v13 = vld [vmem:[#allocation7 + $0x198] sm:$0xff]  ;;  %s5689_s9 = scalar_lea.vmem [#allocation12], %s3019_s30  ;;  %vm1219_vm4 = vcmask 1042432   ;;  %vm1319_vm5 = vcmask 1041408  }
  0x8c   : > { %v4237_v8 = vpack.c.bf16 %v381_v6, %v380_v5  ;;  %v347_v9 = vld [vmem:[#allocation7] sm:$0xff]  ;;  %v348_v10 = vld [vmem:[#allocation7 + $0x8] sm:$0xff]  ;;  %4236 = vmatprep.subr.bf16.mxu0 %v4235_v3  ;;  %v365_v14 = vld [vmem:[#allocation7 + $0x90] sm:$0xff]  ;;  %v4239_v16 = vpack.c.bf16 %v399_v13, %v398_v11  ;;  %s3029_s12 = sshll.u32 %s5433_s28, 10  ;;  %s2903_s8 = sshll.u32 %s5689_s9, 4  ;;  %s6286_s8 = int_to_ptr.vmem [resolvable:$true] %s2903_s8 }
  0x8d   : > { %v4269_v12 = vpack.c.bf16 %v348_v10, %v347_v9  ;;  %v366_v15 = vld [vmem:[#allocation7 + $0x98] sm:$0xff]  ;;  %4268 = vmatprep.subr.bf16.mxu1 %v4267_v7  ;;  %v382_v18 = vld [vmem:[#allocation7 + $0x110] sm:$0xff]  ;;  %v400_v23 = vld [vmem:[#allocation7 + $0x1a0] sm:$0xff]  ;;  %s6284_s13 = scalar_lea.hbm %s6340_s7, %s3029_s12  ;;  %s5284_s28 = scalar_lea.vmem %s6286_s8, 1024 }
  0x8e   : > { %4238 = vmatpush3.bf16.msra.mxu0 %v4237_v8  ;;  %v4271_v17 = vpack.c.bf16 %v366_v15, %v365_v14  ;;  %v383_v19 = vld [vmem:[#allocation7 + $0x118] sm:$0xff]  ;;  %v349_v20 = vld [vmem:[#allocation7 + $0x10] sm:$0xff]  ;;  %v401_v24 = vld [vmem:[#allocation7 + $0x1a8] sm:$0xff]  ;;  %p5285_p10 = scmp.ne.s32.totalorder %s6286_s8, %s5284_s28  ;;  %s5369_s30 = smov [#allocation12]  }
  0x8f   : > { %4270 = vmatpush3.bf16.msra.mxu1 %v4269_v12  ;;  %v4241_v21 = vpack.c.bf16 %v383_v19, %v382_v18  ;;  %v350_v22 = vld [vmem:[#allocation7 + $0x18] sm:$0xff]  ;;  %4240 = vmatprep.subr.bf16.mxu0 %v4239_v16  ;;  %v4243_v26 = vpack.c.bf16 %v401_v24, %v400_v23  ;;  %v367_v27 = vld [vmem:[#allocation7 + $0xa0] sm:$0xff]  ;;  %v368_v28 = vld [vmem:[#allocation7 + $0xa8] sm:$0xff]  ;;  %s5288_s23 = sshll.u32 %s5369_s30, 4  ;;  %s5289_s23 = int_to_ptr.vmem [resolvable:$false] %s5288_s23 }
  0x90   : > { %4272 = vmatprep.subr.bf16.mxu1 %v4271_v17  ;;  %v4273_v25 = vpack.c.bf16 %v350_v22, %v349_v20  ;;  %v384_v29 = vld [vmem:[#allocation7 + $0x120] sm:$0xff]  ;;  %v4275_v30 = vpack.c.bf16 %v368_v28, %v367_v27  ;;  %v385_v31 = vld [vmem:[#allocation7 + $0x128] sm:$0xff]  ;;  %v402_v35 = vld [vmem:[#allocation7 + $0x1b0] sm:$0xff]  ;;  %p5286_p3 = pnand %p5285_p10, %p5566_p5  ;;  %s5290_s10 = scalar_lea.vmem %s5289_s23, 2048 }
  0x91   : > { %v351_v32 = vld [vmem:[#allocation7 + $0x20] sm:$0xff]  ;;  %v352_v33 = vld [vmem:[#allocation7 + $0x28] sm:$0xff]  ;;  %v4245_v34 = vpack.c.bf16 %v385_v31, %v384_v29  ;;  %v403_v36 = vld [vmem:[#allocation7 + $0x1b8] sm:$0xff]  ;;  %p5291_p12 = scmp.lt.s32.totalorder %s6286_s8, %s5289_s23  ;;  %p5292_p1 = scmp.lt.s32.totalorder %s5290_s10, %s5284_s28 }
  0x92   : > { %4242 = vmatpush3.bf16.msra.mxu0 %v4241_v21  ;;  %v369_v37 = vld [vmem:[#allocation7 + $0xb0] sm:$0xff]  ;;  %v4277_v38 = vpack.c.bf16 %v352_v33, %v351_v32  ;;  %v4247_v39 = vpack.c.bf16 %v403_v36, %v402_v35  ;;  %v370_v40 = vld [vmem:[#allocation7 + $0xb8] sm:$0xff]  ;;  %v404_v46 = vld [vmem:[#allocation7 + $0x1c0] sm:$0xff]  ;;  %p5287_p7 = pneg %p5286_p3 }
  0x93   : > { %4274 = vmatpush3.bf16.msra.mxu1 %v4273_v25  ;;  %4244 = vmatprep.subr.bf16.mxu0 %v4243_v26  ;;  %v386_v41 = vld [vmem:[#allocation7 + $0x130] sm:$0xff]  ;;  %v387_v42 = vld [vmem:[#allocation7 + $0x138] sm:$0xff]  ;;  %v4279_v43 = vpack.c.bf16 %v370_v40, %v369_v37  ;;  %v405_v47 = vld [vmem:[#allocation7 + $0x1c8] sm:$0xff]  ;;  %p5293_p2 = por %p5292_p1, %p5291_p12 }
  0x94   : > { %4276 = vmatprep.subr.bf16.mxu1 %v4275_v30  ;;  %v353_v44 = vld [vmem:[#allocation7 + $0x30] sm:$0xff]  ;;  %v354_v45 = vld [vmem:[#allocation7 + $0x38] sm:$0xff]  ;;  %v371_v48 = vld [vmem:[#allocation7 + $0xc0] sm:$0xff]  ;;  %v4249_v50 = vpack.c.bf16 %v387_v42, %v386_v41  ;;  %v4251_v52 = vpack.c.bf16 %v405_v47, %v404_v46 }
  0x95   : > { %v372_v49 = vld [vmem:[#allocation7 + $0xc8] sm:$0xff]  ;;  %v4281_v51 = vpack.c.bf16 %v354_v45, %v353_v44  ;;  %v388_v53 = vld [vmem:[#allocation7 + $0x140] sm:$0xff]  ;;  %v406_v58 = vld [vmem:[#allocation7 + $0x1d0] sm:$0xff]  ;;  %p5294_p4 = pnand %p5293_p2, %p5287_p7 }
  0x96   : > { %4246 = vmatpush3.bf16.msra.mxu0 %v4245_v34  ;;  %v389_v54 = vld [vmem:[#allocation7 + $0x148] sm:$0xff]  ;;  %v355_v55 = vld [vmem:[#allocation7 + $0x40] sm:$0xff]  ;;  %v4283_v56 = vpack.c.bf16 %v372_v49, %v371_v48  ;;  %v407_v59 = vld [vmem:[#allocation7 + $0x1d8] sm:$0xff] }
  0x97   : > { %4278 = vmatpush3.bf16.msra.mxu1 %v4277_v38  ;;  %4248 = vmatprep.subr.bf16.mxu0 %v4247_v39  ;;  %v356_v57 = vld [vmem:[#allocation7 + $0x48] sm:$0xff]  ;;  %v373_v60 = vld [vmem:[#allocation7 + $0xd0] sm:$0xff]  ;;  %v374_v61 = vld [vmem:[#allocation7 + $0xd8] sm:$0xff]  ;;  %v4253_v62 = vpack.c.bf16 %v389_v54, %v388_v53  ;;  %v4255_v0 = vpack.c.bf16 %v407_v59, %v406_v58 }
  0x98   : > { %4280 = vmatprep.subr.bf16.mxu1 %v4279_v43  ;;  %v4285_v63 = vpack.c.bf16 %v356_v57, %v355_v55  ;;  %v390_v1 = vld [vmem:[#allocation7 + $0x150] sm:$0xff]  ;;  %v391_v2 = vld [vmem:[#allocation7 + $0x158] sm:$0xff]  ;;  %v4287_v4 = vpack.c.bf16 %v374_v61, %v373_v60  ;;  %v408_v6 = vld [vmem:[#allocation7 + $0x1e0] sm:$0xff] }
  0x99   : > { %v357_v3 = vld [vmem:[#allocation7 + $0x50] sm:$0xff]  ;;  %v358_v5 = vld [vmem:[#allocation7 + $0x58] sm:$0xff]  ;;  %v409_v7 = vld [vmem:[#allocation7 + $0x1e8] sm:$0xff]  ;;  %v4257_v10 = vpack.c.bf16 %v391_v2, %v390_v1 }
  0x9a   : > { %4250 = vmatpush3.bf16.msra.mxu0 %v4249_v50  ;;  %v375_v8 = vld [vmem:[#allocation7 + $0xe0] sm:$0xff]  ;;  %v376_v9 = vld [vmem:[#allocation7 + $0xe8] sm:$0xff]  ;;  %v4289_v13 = vpack.c.bf16 %v358_v5, %v357_v3  ;;  %v4259_v14 = vpack.c.bf16 %v409_v7, %v408_v6  ;;  %v5636_v17 = vld [vmem:[%s5618_s20 + $0x18] sm:$0xff] }
  0x9b   : > { %4282 = vmatpush3.bf16.msra.mxu1 %v4281_v51  ;;  %4252 = vmatprep.subr.bf16.mxu0 %v4251_v52  ;;  %v392_v11 = vld [vmem:[#allocation7 + $0x160] sm:$0xff]  ;;  %v393_v12 = vld [vmem:[#allocation7 + $0x168] sm:$0xff]  ;;  %v4291_v18 = vpack.c.bf16 %v376_v9, %v375_v8  ;;  %v410_v20 = vld [vmem:[#allocation7 + $0x1f0] sm:$0xff]  ;;  %v5640_v23 = vrot.slane %v5636_v17, 1 }
  0x9c   : > { %4284 = vmatprep.subr.bf16.mxu1 %v4283_v56  ;;  %v359_v15 = vld [vmem:[#allocation7 + $0x60] sm:$0xff]  ;;  %v5633_v16 = vld [vmem:[%s5618_s20 + $0x8] sm:$0xff]  ;;  %v411_v21 = vld [vmem:[#allocation7 + $0x1f8] sm:$0xff]  ;;  %v4261_v26 = vpack.c.bf16 %v393_v12, %v392_v11  ;;  %v5664_v56 = vrot.slane %v5636_v17, 2 }
  0x9d   : > { %v360_v19 = vld [vmem:[#allocation7 + $0x68] sm:$0xff]  ;;  %v420_v22 = vrot.slane %v5633_v16, 1  ;;  %566 = vmatprep.mubr.f32.mxu1 %v5633_v16  ;;  %v377_v24 = vld [vmem:[#allocation7 + $0xf0] sm:$0xff]  ;;  %v378_v25 = vld [vmem:[#allocation7 + $0xf8] sm:$0xff]  ;;  %v4263_v31 = vpack.c.bf16 %v411_v21, %v410_v20  ;;  %v614_v55 = vrot.slane %v5633_v16, 2 }
  0x9e   : > { %4254 = vmatpush3.bf16.msra.mxu0 %v4253_v62  ;;  %v394_v27 = vld [vmem:[#allocation7 + $0x170] sm:$0xff]  ;;  %v395_v28 = vld [vmem:[#allocation7 + $0x178] sm:$0xff]  ;;  %v4293_v30 = vpack.c.bf16 %v360_v19, %v359_v15  ;;  %v5648_v33 = vld [vmem:[%s5618_s20] sm:$0xff]  ;;  %v4295_v35 = vpack.c.bf16 %v378_v25, %v377_v24 }
  0x9f   : > { %4286 = vmatpush3.bf16.msra.mxu1 %v4285_v63  ;;  %4256 = vmatprep.subr.bf16.mxu0 %v4255_v0  ;;  %v5645_v29 = vsel %vm416_vm0, %v420_v22, %v5640_v23  ;;  %v361_v32 = vld [vmem:[#allocation7 + $0x70] sm:$0xff]  ;;  %v362_v36 = vld [vmem:[#allocation7 + $0x78] sm:$0xff]  ;;  %v594_v37 = vld [vmem:[#allocation7 + $0x280] sm:$0xff]  ;;  %v4265_v39 = vpack.c.bf16 %v395_v28, %v394_v27  ;;  %v417_v40 = vrot.slane %v5648_v33, 1  ;;  %v5672_v63 = vsel %vm610_vm1, %v614_v55, %v5664_v56 }
  0xa0   : > { %4288 = vmatprep.subr.bf16.mxu1 %v4287_v4  ;;  %v5651_v34 = vld [vmem:[%s5618_s20 + $0x10] sm:$0xff]  ;;  %491 = vmatprep.mubr.f32.mxu0 %v5645_v29  ;;  %v595_v38 = vld [vmem:[#allocation7 + $0x288] sm:$0xff]  ;;  %v4297_v42 = vpack.c.bf16 %v362_v36, %v361_v32  ;;  %v578_v44 = vld [vmem:[#allocation7 + $0x200] sm:$0xff] }
  0xa1   : > { %v5656_v41 = vrot.slane %v5651_v34, 1  ;;  %v4299_v43 = vpack.c.bf16 %v595_v38, %v594_v37  ;;  %v579_v45 = vld [vmem:[#allocation7 + $0x208] sm:$0xff]  ;;  %v596_v46 = vld [vmem:[#allocation7 + $0x290] sm:$0xff]  ;;  %v597_v47 = vld [vmem:[#allocation7 + $0x298] sm:$0xff]  ;;  %v5679_v32 = vrot.slane %v5651_v34, 2 }
  0xa2   : > { %4258 = vmatpush3.bf16.msra.mxu0 %v4257_v10  ;;  %v4301_v49 = vpack.c.bf16 %v579_v45, %v578_v44  ;;  %v4303_v50 = vpack.c.bf16 %v597_v47, %v596_v46  ;;  %v580_v51 = vld [vmem:[#allocation7 + $0x210] sm:$0xff]  ;;  %v581_v52 = vld [vmem:[#allocation7 + $0x218] sm:$0xff]  ;;  %v598_v53 = vld [vmem:[#allocation7 + $0x2a0] sm:$0xff] }
  0xa3   : > { %4290 = vmatpush3.bf16.msra.mxu1 %v4289_v13  ;;  %4260 = vmatprep.subr.bf16.mxu0 %v4259_v14  ;;  %v5660_v48 = vsel %vm416_vm0, %v417_v40, %v5656_v41  ;;  %v599_v54 = vld [vmem:[#allocation7 + $0x2a8] sm:$0xff]  ;;  %v4305_v57 = vpack.c.bf16 %v581_v52, %v580_v51  ;;  %v582_v59 = vld [vmem:[#allocation7 + $0x220] sm:$0xff]  ;;  %v600_v61 = vld [vmem:[#allocation7 + $0x2b0] sm:$0xff]  ;;  %v5368_v51 = vmov 0.0  }
  0xa4   : > { %4292 = vmatprep.subr.bf16.mxu1 %v4291_v18  ;;  %v4307_v58 = vpack.c.bf16 %v599_v54, %v598_v53  ;;  %v583_v60 = vld [vmem:[#allocation7 + $0x228] sm:$0xff]  ;;  %v601_v62 = vld [vmem:[#allocation7 + $0x2b8] sm:$0xff]  ;;  %v584_v2 = vld [vmem:[#allocation7 + $0x230] sm:$0xff]  ;;  %345 = vst [vmem:[#allocation2] sm:$0xff] %v5368_v51 }
  0xa5   : > { %v4309_v0 = vpack.c.bf16 %v583_v60, %v582_v59  ;;  %v4311_v1 = vpack.c.bf16 %v601_v62, %v600_v61  ;;  %v585_v3 = vld [vmem:[#allocation7 + $0x238] sm:$0xff]  ;;  %v602_v4 = vld [vmem:[#allocation7 + $0x2c0] sm:$0xff]  ;;  %v603_v5 = vld [vmem:[#allocation7 + $0x2c8] sm:$0xff]  ;;  %346 = vst [vmem:[#allocation2 + $0x8] sm:$0xff] %v5368_v51 }
  0xa6   : > { %4262 = vmatpush3.bf16.msra.mxu0 %v4261_v26  ;;  %v4313_v6 = vpack.c.bf16 %v585_v3, %v584_v2  ;;  %v4315_v7 = vpack.c.bf16 %v603_v5, %v602_v4  ;;  %v586_v8 = vld [vmem:[#allocation7 + $0x240] sm:$0xff]  ;;  %v587_v9 = vld [vmem:[#allocation7 + $0x248] sm:$0xff]  ;;  %v604_v10 = vld [vmem:[#allocation7 + $0x2d0] sm:$0xff]  ;;  %711 = vst [vmem:[#allocation3] sm:$0xff] %v5368_v51 }
  0xa7   : > { %4294 = vmatpush3.bf16.msra.mxu1 %v4293_v30  ;;  %4264 = vmatprep.subr.bf16.mxu0 %v4263_v31  ;;  %v605_v11 = vld [vmem:[#allocation7 + $0x2d8] sm:$0xff]  ;;  %v4317_v12 = vpack.c.bf16 %v587_v9, %v586_v8  ;;  %v588_v14 = vld [vmem:[#allocation7 + $0x250] sm:$0xff]  ;;  %v606_v16 = vld [vmem:[#allocation7 + $0x2e0] sm:$0xff]  ;;  %v611_v31 = vrot.slane %v5648_v33, 2  ;;  %712 = vst [vmem:[#allocation3 + $0x8] sm:$0xff] %v5368_v51 }
  0xa8   : > { %4296 = vmatprep.subr.bf16.mxu1 %v4295_v35  ;;  %v4319_v13 = vpack.c.bf16 %v605_v11, %v604_v10  ;;  %v589_v15 = vld [vmem:[#allocation7 + $0x258] sm:$0xff]  ;;  %v590_v20 = vld [vmem:[#allocation7 + $0x260] sm:$0xff]  ;;  %v591_v21 = vld [vmem:[#allocation7 + $0x268] sm:$0xff]  ;;  %2859 = vst [vmem:[%s5689_s9] sm:$0xff] %v5368_v51 }
  0xa9   : > { %v4321_v18 = vpack.c.bf16 %v589_v15, %v588_v14  ;;  %v608_v22 = vld [vmem:[#allocation7 + $0x2f0] sm:$0xff]  ;;  %v609_v24 = vld [vmem:[#allocation7 + $0x2f8] sm:$0xff]  ;;  %v4325_v25 = vpack.c.bf16 %v591_v21, %v590_v20  ;;  %v5683_v35 = vsel %vm610_vm1, %v611_v31, %v5679_v32  ;;  %v730_v36 = vld [vmem:[#allocation9 + $0x80] sm:$0xff]  ;;  %2860 = vst [vmem:[%s5689_s9 + $0x8] sm:$0xff] %v5368_v51 }
  0xaa   : > { %4266 = vmatpush3.bf16.msra.mxu0 %v4265_v39  ;;  %v4327_v26 = vpack.c.bf16 %v609_v24, %v608_v22  ;;  %v592_v27 = vld [vmem:[#allocation7 + $0x270] sm:$0xff]  ;;  %v593_v28 = vld [vmem:[#allocation7 + $0x278] sm:$0xff]  ;;  %v731_v37 = vld [vmem:[#allocation9 + $0x88] sm:$0xff]  ;;  %2863 = vst [vmem:[%s5689_s9 + $0x20] sm:$0xff] %v5368_v51 }
  0xab   : > { %4298 = vmatpush3.bf16.msra.mxu1 %v4297_v42  ;;  %4300 = vmatprep.subr.bf16.mxu0 %v4299_v43  ;;  %v4329_v30 = vpack.c.bf16 %v593_v28, %v592_v27  ;;  %v732_v38 = vld [vmem:[#allocation9 + $0x90] sm:$0xff]  ;;  %v4331_v39 = vpack.c.bf16 %v731_v37, %v730_v36  ;;  %v735_v42 = vld [vmem:[#allocation9 + $0xa8] sm:$0xff]  ;;  %v737_v45 = vld [vmem:[#allocation9 + $0xb8] sm:$0xff]  ;;  %2864 = vst [vmem:[%s5689_s9 + $0x28] sm:$0xff] %v5368_v51 }
  0xac   : > { %v736_v44 = vld [vmem:[#allocation9 + $0xb0] sm:$0xff]  ;;  %v738_v47 = vld [vmem:[#allocation9 + $0xc0] sm:$0xff]  ;;  %v741_v53 = vld [vmem:[#allocation9 + $0xd8] sm:$0xff] }
  0xad   : > { %492 = vmatmul.mubr.f32.vlgmr.msra.gmra.mrb[0].mxu0 %v5660_v48  ;;  %4332 = vmatprep.subr.bf16.mxu1 %v4331_v39  ;;  %v4343_v46 = vpack.c.bf16 %v737_v45, %v736_v44  ;;  %v740_v52 = vld [vmem:[#allocation9 + $0xd0] sm:$0xff]  ;;  %v742_v55 = vld [vmem:[#allocation9 + $0xe0] sm:$0xff]  ;;  %v745_v60 = vld [vmem:[#allocation9 + $0xf8] sm:$0xff] }
  0xae   : > { %567 = vmatmul.mubr.f32.vlgmr.msra.gmra.mrb[0].mxu1 %v5648_v33  ;;  %4302 = vmatpush3.bf16.msra.mxu0 %v4301_v49  ;;  %v733_v33 = vld [vmem:[#allocation9 + $0x98] sm:$0xff]  ;;  %v739_v49 = vld [vmem:[#allocation9 + $0xc8] sm:$0xff]  ;;  %v4351_v54 = vpack.c.bf16 %v741_v53, %v740_v52  ;;  %v713_v62 = vld [vmem:[#allocation9] sm:$0xff] }
  0xaf   : > { %4304 = vmatprep.subr.bf16.mxu0 %v4303_v50  ;;  %496 = vmatprep.mubr.f32.mxu0 %v5640_v23  ;;  %v4335_v40 = vpack.c.bf16 %v733_v33, %v732_v38  ;;  %v4347_v50 = vpack.c.bf16 %v739_v49, %v738_v47  ;;  %v715_v31 = vld [vmem:[#allocation9 + $0x10] sm:$0xff]  ;;  %v716_v36 = vld [vmem:[#allocation9 + $0x18] sm:$0xff]  ;;  %v722_v47 = vld [vmem:[#allocation9 + $0x48] sm:$0xff] }
  0xb0   : > { %571 = vmatprep.mubr.f32.mxu1 %v5636_v17  ;;  %v607_v17 = vld [vmem:[#allocation7 + $0x2e8] sm:$0xff]  ;;  %4334 = vmatpush3.bf16.msra.mxu1 %v4331_v39  ;;  %v4367_v33 = vpack.c.bf16 %v716_v36, %v715_v31  ;;  %v720_v44 = vld [vmem:[#allocation9 + $0x38] sm:$0xff]  ;;  %v725_v53 = vld [vmem:[#allocation9 + $0x60] sm:$0xff] }
  0xb1   : > { %497 = vmatmul.mubr.f32.gmra.mrb[2].mxu0 %v5656_v41  ;;  %v4323_v19 = vpack.c.bf16 %v607_v17, %v606_v16  ;;  %4336 = vmatprep.subr.bf16.mxu1 %v4335_v40  ;;  %v724_v51 = vld [vmem:[#allocation9 + $0x58] sm:$0xff]  ;;  %v1005_v31 = vld [vmem:[#allocation9 + $0x190] sm:$0xff] }
  0xb2   : > { %4306 = vmatpush3.bf16.msra.mxu0 %v4305_v57  ;;  %572 = vmatmul.mubr.f32.gmra.mrb[2].mxu1 %v5651_v34  ;;  %v734_v34 = vld [vmem:[#allocation9 + $0xa0] sm:$0xff]  ;;  %v743_v57 = vld [vmem:[#allocation9 + $0xe8] sm:$0xff]  ;;  %v1006_v36 = vld [vmem:[#allocation9 + $0x198] sm:$0xff] }
  0xb3   : > { %4308 = vmatprep.subr.bf16.mxu0 %v4307_v58  ;;  %685 = vmatprep.mubr.f32.mxu0 %v5672_v63  ;;  %v4339_v43 = vpack.c.bf16 %v735_v42, %v734_v34  ;;  %v744_v58 = vld [vmem:[#allocation9 + $0xf0] sm:$0xff]  ;;  %v4355_v59 = vpack.c.bf16 %v743_v57, %v742_v55  ;;  %v718_v34 = vld [vmem:[#allocation9 + $0x28] sm:$0xff] }
  0xb4   : > { %4338 = vmatpush3.bf16.msra.mxu1 %v4335_v40  ;;  %v4359_v61 = vpack.c.bf16 %v745_v60, %v744_v58  ;;  %v717_v40 = vld [vmem:[#allocation9 + $0x20] sm:$0xff]  ;;  %v727_v57 = vld [vmem:[#allocation9 + $0x70] sm:$0xff]  ;;  %v728_v58 = vld [vmem:[#allocation9 + $0x78] sm:$0xff] }
  0xb5   : > { %4340 = vmatprep.subr.bf16.mxu1 %v4339_v43  ;;  %v4371_v42 = vpack.c.bf16 %v718_v34, %v717_v40  ;;  %v904_v60 = vld [vmem:[#allocation9 + $0x100] sm:$0xff]  ;;  %v4431_v40 = vpack.c.bf16 %v1006_v36, %v1005_v31  ;;  %v1109_v36 = vld [vmem:[#allocation9 + $0x230] sm:$0xff] }
  0xb6   : > { %4310 = vmatpush3.bf16.msra.mxu0 %v4309_v0  ;;  %v714_v0 = vld [vmem:[#allocation9 + $0x8] sm:$0xff]  ;;  %v1007_v34 = vld [vmem:[#allocation9 + $0x1a0] sm:$0xff] }
  0xb7   : > { %4312 = vmatprep.subr.bf16.mxu0 %v4311_v1  ;;  %v4363_v1 = vpack.c.bf16 %v714_v0, %v713_v62  ;;  %v906_v0 = vld [vmem:[#allocation9 + $0x110] sm:$0xff] }
  0xb8   : > { %4342 = vmatpush3.bf16.msra.mxu1 %v4339_v43  ;;  %v719_v43 = vld [vmem:[#allocation9 + $0x30] sm:$0xff] }
  0xb9   : > { %4344 = vmatprep.subr.bf16.mxu1 %v4343_v46  ;;  %v4375_v45 = vpack.c.bf16 %v720_v44, %v719_v43  ;;  %v1431_v44 = vld [vmem:[#allocation10 + $0x80] sm:$0xff] }
  0xba   : > { %4314 = vmatpush3.bf16.msra.mxu0 %v4313_v6 }
  0xbb   : > { %4316 = vmatprep.subr.bf16.mxu0 %v4315_v7 }
  0xbc   : > { %4346 = vmatpush3.bf16.msra.mxu1 %v4343_v46  ;;  %v721_v46 = vld [vmem:[#allocation9 + $0x40] sm:$0xff] }
  0xbd   : > { %4348 = vmatprep.subr.bf16.mxu1 %v4347_v50  ;;  %v4379_v49 = vpack.c.bf16 %v722_v47, %v721_v46  ;;  %v1433_v46 = vld [vmem:[#allocation10 + $0x90] sm:$0xff] }
  0xbe   : > { %4318 = vmatpush3.bf16.msra.mxu0 %v4317_v12 }
  0xbf   : > { %4320 = vmatprep.subr.bf16.mxu0 %v4319_v13 }
  0xc0   : > { %4350 = vmatpush3.bf16.msra.mxu1 %v4347_v50  ;;  %v723_v50 = vld [vmem:[#allocation9 + $0x50] sm:$0xff] }
  0xc1   : > { %4352 = vmatprep.subr.bf16.mxu1 %v4351_v54  ;;  %v4383_v52 = vpack.c.bf16 %v724_v51, %v723_v50 }
  0xc2   : > { %4322 = vmatpush3.bf16.msra.mxu0 %v4321_v18 }
  0xc3   : > { %4324 = vmatprep.subr.bf16.mxu0 %v4323_v19  ;;  %v3020_v19 = vld [vmem:[%s6335_s2] ss:$0 sm:$0xff] }
  0xc4   : > { %4354 = vmatpush3.bf16.msra.mxu1 %v4351_v54  ;;  %v726_v54 = vld [vmem:[#allocation9 + $0x68] sm:$0xff] }
  0xc5   : > { %4356 = vmatprep.subr.bf16.mxu1 %v4355_v59  ;;  %v4387_v55 = vpack.c.bf16 %v726_v54, %v725_v53  ;;  %v1436_v53 = vld [vmem:[#allocation10 + $0xa8] sm:$0xff]  ;;  %v1009_v54 = vld [vmem:[#allocation9 + $0x1b0] sm:$0xff] }
  0xc6   : > { %4326 = vmatpush3.bf16.msra.mxu0 %v4325_v25 }
  0xc7   : > { %4328 = vmatprep.subr.bf16.mxu0 %v4327_v26 }
  0xc8   : > { %4358 = vmatpush3.bf16.msra.mxu1 %v4355_v59  ;;  %v4391_v59 = vpack.c.bf16 %v728_v58, %v727_v57 }
  0xc9   : > { %4360 = vmatprep.subr.bf16.mxu1 %v4359_v61 }
  0xca   : > { %4330 = vmatpush3.bf16.msra.mxu0 %v4329_v30 }
  0xcc   : > { %4362 = vmatpush3.bf16.msra.mxu1 %v4359_v61  ;;  %v905_v61 = vld [vmem:[#allocation9 + $0x108] sm:$0xff] }
  0xcd   : > { %686 = vmatmul.mubr.f32.vlgmr.msra.gmra.mrb[4].mxu0 %v5683_v35  ;;  %4364 = vmatprep.subr.bf16.mxu1 %v4363_v1  ;;  %v4395_v62 = vpack.c.bf16 %v905_v61, %v904_v60  ;;  %v1438_v60 = vld [vmem:[#allocation10 + $0xb8] sm:$0xff]  ;;  %v1011_v61 = vld [vmem:[#allocation9 + $0x1c0] sm:$0xff] }
  0xce   : > { %690 = vmatprep.mubr.f32.mxu0 %v5664_v56 }
  0xd1   : > { %691 = vmatmul.mubr.f32.gmra.mrb[6].mxu0 %v5679_v32 }
 0x180   : > { %v3062_v2 = vpop.f32.mrb[0].mxu0 }
 0x181   : > { %v3100_v3 = vpop.f32.mrb[0].mxu1  ;;  %v3063_v4 = vpop.f32.mrb[1].mxu0 }
 0x182   : > { %v3064_v5 = vadd.f32 %v3063_v4, %v3062_v2  ;;  %v3101_v6 = vpop.f32.mrb[1].mxu1 }
 0x183   : > { %v3102_v7 = vadd.f32 %v3101_v6, %v3100_v3  ;;  %v909_v6 = vld [vmem:[#allocation9 + $0x128] sm:$0xff] }
 0x184   : > { %v3065_v8 = vpop.f32.mrb[2].mxu0 }
 0x185   : > { %v569_v9 = vadd.f32 %v3102_v7, %v3064_v5  ;;  %v3103_v10 = vpop.f32.mrb[2].mxu1  ;;  %v3066_v11 = vpop.f32.mrb[3].mxu0  ;;  %v908_v5 = vld [vmem:[#allocation9 + $0x120] sm:$0xff] }
 0x186   : > { %v3067_v12 = vadd.f32 %v3066_v11, %v3065_v8  ;;  %v3104_v13 = vpop.f32.mrb[3].mxu1  ;;  %v4403_v8 = vpack.c.bf16 %v909_v6, %v908_v5  ;;  %v1013_v5 = vld [vmem:[#allocation9 + $0x1d0] sm:$0xff]  ;;  %v1014_v6 = vld [vmem:[#allocation9 + $0x1d8] sm:$0xff] }
 0x187   : > { %v3105_v14 = vadd.f32 %v3104_v13, %v3103_v10  ;;  %v911_v10 = vld [vmem:[#allocation9 + $0x138] sm:$0xff]  ;;  %v913_v13 = vld [vmem:[#allocation9 + $0x148] sm:$0xff] }
 0x189   : > { %v574_v15 = vadd.f32 %v3105_v14, %v3067_v12  ;;  %v912_v12 = vld [vmem:[#allocation9 + $0x140] sm:$0xff] }
 0x18a   : > { %v4411_v14 = vpack.c.bf16 %v913_v13, %v912_v12  ;;  %v1017_v13 = vld [vmem:[#allocation9 + $0x1f0] sm:$0xff] }
 0x1a0   : > { %v3138_v16 = vpop.f32.mrb[4].mxu0 }
 0x1a1   : > { %v3139_v17 = vpop.f32.mrb[5].mxu0 }
 0x1a2   : > { %v3140_v18 = vadd.f32 %v3139_v17, %v3138_v16  ;;  %v915_v16 = vld [vmem:[#allocation9 + $0x158] sm:$0xff] }
 0x1a4   : > { %v696_v20 = vadd.f32 %v3140_v18, %v569_v9  ;;  %v3141_v21 = vpop.f32.mrb[6].mxu0  ;;  %v910_v9 = vld [vmem:[#allocation9 + $0x130] sm:$0xff]  ;;  %v916_v18 = vld [vmem:[#allocation9 + $0x160] sm:$0xff] }
 0x1a5   : > { %v3142_v22 = vpop.f32.mrb[7].mxu0  ;;  %v4407_v11 = vpack.c.bf16 %v911_v10, %v910_v9  ;;  %v4447_v9 = vpack.c.bf16 %v1014_v6, %v1013_v5  ;;  %v1015_v10 = vld [vmem:[#allocation9 + $0x1e0] sm:$0xff] }
 0x1a6   : > { %v705_v24 = vadd.f32 %v3020_v19, %v696_v20  ;;  %v3143_v25 = vadd.f32 %v3142_v22, %v3141_v21  ;;  %v918_v21 = vld [vmem:[#allocation9 + $0x170] sm:$0xff]  ;;  %v919_v22 = vld [vmem:[#allocation9 + $0x178] sm:$0xff]  ;;  %v1207_v6 = vld [vmem:[#allocation9 + $0x2a0] sm:$0xff] }
 0x1a8   : > { %v697_v26 = vadd.f32 %v3143_v25, %v574_v15  ;;  %707 = vst [vmem:[#allocation2 + $0x1] sm:$0xff] %v705_v24  ;;  %v914_v15 = vld [vmem:[#allocation9 + $0x150] sm:$0xff]  ;;  %v4423_v24 = vpack.c.bf16 %v919_v22, %v918_v21  ;;  %v1003_v25 = vld [vmem:[#allocation9 + $0x180] sm:$0xff] }
 0x1a9   : > { %v4415_v17 = vpack.c.bf16 %v915_v16, %v914_v15  ;;  %v1103_v16 = vld [vmem:[#allocation9 + $0x200] sm:$0xff] }
 0x1aa   : > { %v706_v27 = vadd.f32 %v3020_v19, %v697_v26  ;;  %v917_v19 = vld [vmem:[#allocation9 + $0x168] sm:$0xff] }
 0x1ab   : > { %v4419_v20 = vpack.c.bf16 %v917_v19, %v916_v18  ;;  %v1004_v26 = vld [vmem:[#allocation9 + $0x188] sm:$0xff]  ;;  %v1105_v19 = vld [vmem:[#allocation9 + $0x210] sm:$0xff] }
 0x1ac   : > { %708 = vst [vmem:[#allocation2 + $0x9] sm:$0x3f] %v706_v27  ;;  %v4427_v27 = vpack.c.bf16 %v1004_v26, %v1003_v25  ;;  %v1107_v25 = vld [vmem:[#allocation9 + $0x220] sm:$0xff]  ;;  %v1108_v26 = vld [vmem:[#allocation9 + $0x228] sm:$0xff] }
 0x1ad   : > { %v4467_v31 = vpack.c.bf16 %v1108_v26, %v1107_v25  ;;  %v1217_v26 = vld [vmem:[#allocation9 + $0x2f0] sm:$0xff] }
 0x1af   : > { %v5698_v28 = vld [vmem:[#allocation2] sm:$0xff] }
 0x1b0   : > { %2885 = vst [vmem:[%s5689_s9 + $0x10] sm:$0xff] %v5698_v28  ;;  %v748_v37 = vrot.slane %v5698_v28, 1  ;;  %v920_v3 = vrot.slane %v5698_v28, 2  ;;  %v1120_v22 = vrot.slane %v5698_v28, 4 }
 0x1b3   : > { %v5702_v30 = vld [vmem:[#allocation2 + $0x8] sm:$0xff] }
 0x1b4   : > { %v5706_v38 = vrot.slane %v5702_v30, 1  ;;  %2886 = vst [vmem:[%s5689_s9 + $0x30] sm:$0xff] %v5702_v30  ;;  %v5718_v2 = vrot.slane %v5702_v30, 2  ;;  %v5758_v21 = vrot.slane %v5702_v30, 4 }
 0x1b6   : > { %v5712_v39 = vsel %vm416_vm0, %v748_v37, %v5706_v38  ;;  %v5724_v7 = vsel %vm610_vm1, %v920_v3, %v5718_v2  ;;  %v5728_v37 = vrot.slane %v5702_v30, 3  ;;  %v1439_v3 = vld [vmem:[#allocation10 + $0xc0] sm:$0xff]  ;;  %6372 = vst [vmem:[#allocation18_spill] sm:$0xff] %v5758_v21 }
 0x1b7   : > { %3672 = vmatprep.mubr.f32.mxu1 %v5712_v39 }
 0x1b8   : > { %3673 = vmatmul.mubr.f32.vlgmr.msra.gmra.mrb[4].mxu1 %v5706_v38 }
 0x1b9   : > { %4366 = vmatpush3.bf16.msra.mxu1 %v4363_v1  ;;  %3707 = vmatprep.mubr.f32.mxu1 %v5698_v28  ;;  %v907_v1 = vld [vmem:[#allocation9 + $0x118] sm:$0xff] }
 0x1ba   : > { %4368 = vmatprep.subr.bf16.mxu1 %v4367_v33  ;;  %v4399_v4 = vpack.c.bf16 %v907_v1, %v906_v0 }
 0x1bd   : > { %4370 = vmatpush3.bf16.msra.mxu1 %v4367_v33  ;;  %v1020_v33 = vrot.slane %v5698_v28, 3 }
 0x1be   : > { %4372 = vmatprep.subr.bf16.mxu1 %v4371_v42 }
 0x1bf   : > { %v5734_v43 = vsel %vm1019_vm2, %v1020_v33, %v5728_v37  ;;  %v1110_v33 = vld [vmem:[#allocation9 + $0x238] sm:$0xff] }
 0x1c1   : > { %4374 = vmatpush3.bf16.msra.mxu1 %v4371_v42  ;;  %v1008_v42 = vld [vmem:[#allocation9 + $0x1a8] sm:$0xff] }
 0x1c2   : > { %4376 = vmatprep.subr.bf16.mxu1 %v4375_v45  ;;  %v4435_v50 = vpack.c.bf16 %v1008_v42, %v1007_v34  ;;  %v1111_v34 = vld [vmem:[#allocation9 + $0x240] sm:$0xff]  ;;  %v1112_v42 = vld [vmem:[#allocation9 + $0x248] sm:$0xff] }
 0x1c5   : > { %4378 = vmatpush3.bf16.msra.mxu1 %v4375_v45  ;;  %v1432_v45 = vld [vmem:[#allocation10 + $0x88] sm:$0xff] }
 0x1c6   : > { %4380 = vmatprep.subr.bf16.mxu1 %v4379_v49  ;;  %v5737_v47 = vpack.c.bf16 %v1432_v45, %v1431_v44  ;;  %v4475_v44 = vpack.c.bf16 %v1112_v42, %v1111_v34  ;;  %v1113_v45 = vld [vmem:[#allocation9 + $0x250] sm:$0xff] }
 0x1c7   : > { %v1305_v42 = vld [vmem:[#allocation9 + $0x310] sm:$0xff] }
 0x1c8   : > { %4556 = vmatprep.subr.bf16.mxu0 %v5737_v47 }
 0x1c9   : > { %4382 = vmatpush3.bf16.msra.mxu1 %v4379_v49  ;;  %v1434_v49 = vld [vmem:[#allocation10 + $0x98] sm:$0xff]  ;;  %4558 = vmatpush3.bf16.msra.mxu0 %v5737_v47 }
 0x1ca   : > { %4384 = vmatprep.subr.bf16.mxu1 %v4383_v52  ;;  %v5739_v51 = vpack.c.bf16 %v1434_v49, %v1433_v46  ;;  %v1114_v46 = vld [vmem:[#allocation9 + $0x258] sm:$0xff] }
 0x1cb   : > { %v4479_v49 = vpack.c.bf16 %v1114_v46, %v1113_v45  ;;  %v1321_v45 = vrot.slane %v5702_v30, 6  ;;  %v1320_v46 = vrot.slane %v5698_v28, 6 }
 0x1cc   : > { %4560 = vmatprep.subr.bf16.mxu0 %v5739_v51 }
 0x1cd   : > { %4386 = vmatpush3.bf16.msra.mxu1 %v4383_v52  ;;  %v1435_v52 = vld [vmem:[#allocation10 + $0xa0] sm:$0xff]  ;;  %4562 = vmatpush3.bf16.msra.mxu0 %v5739_v51 }
 0x1ce   : > { %4388 = vmatprep.subr.bf16.mxu1 %v4387_v55  ;;  %v5744_v57 = vpack.c.bf16 %v1436_v53, %v1435_v52  ;;  %v1116_v52 = vld [vmem:[#allocation9 + $0x268] sm:$0xff] }
 0x1d0   : > { %4564 = vmatprep.subr.bf16.mxu0 %v5744_v57 }
 0x1d1   : > { %4390 = vmatpush3.bf16.msra.mxu1 %v4387_v55  ;;  %v1010_v55 = vld [vmem:[#allocation9 + $0x1b8] sm:$0xff]  ;;  %4566 = vmatpush3.bf16.msra.mxu0 %v5744_v57 }
 0x1d2   : > { %4392 = vmatprep.subr.bf16.mxu1 %v4391_v59  ;;  %v4439_v58 = vpack.c.bf16 %v1010_v55, %v1009_v54  ;;  %v1117_v54 = vld [vmem:[#allocation9 + $0x270] sm:$0xff]  ;;  %v1118_v55 = vld [vmem:[#allocation9 + $0x278] sm:$0xff] }
 0x1d5   : > { %4394 = vmatpush3.bf16.msra.mxu1 %v4391_v59  ;;  %v1437_v59 = vld [vmem:[#allocation10 + $0xb0] sm:$0xff] }
 0x1d6   : > { %4396 = vmatprep.subr.bf16.mxu1 %v4395_v62  ;;  %v5748_v0 = vpack.c.bf16 %v1438_v60, %v1437_v59  ;;  %v1203_v59 = vld [vmem:[#allocation9 + $0x280] sm:$0xff]  ;;  %v1204_v60 = vld [vmem:[#allocation9 + $0x288] sm:$0xff] }
 0x1d8   : > { %3708 = vmatmul.mubr.f32.vlgmr.msra.gmra.mrb[4].mxu1 %v5702_v30  ;;  %4568 = vmatprep.subr.bf16.mxu0 %v5748_v0 }
 0x1d9   : > { %4398 = vmatpush3.bf16.msra.mxu1 %v4395_v62  ;;  %3742 = vmatprep.mubr.f32.mxu1 %v5724_v7  ;;  %v1012_v62 = vld [vmem:[#allocation9 + $0x1c8] sm:$0xff] }
 0x1da   : > { %4400 = vmatprep.subr.bf16.mxu1 %v4399_v4  ;;  %v4443_v1 = vpack.c.bf16 %v1012_v62, %v1011_v61  ;;  %4570 = vmatpush3.bf16.msra.mxu0 %v5748_v0  ;;  %v4491_v61 = vpack.c.bf16 %v1204_v60, %v1203_v59  ;;  %v1205_v62 = vld [vmem:[#allocation9 + $0x290] sm:$0xff]  ;;  %v1311_v59 = vld [vmem:[#allocation9 + $0x340] sm:$0xff]  ;;  %v1312_v60 = vld [vmem:[#allocation9 + $0x348] sm:$0xff] }
 0x1dd   : > { %4402 = vmatpush3.bf16.msra.mxu1 %v4399_v4  ;;  %v1440_v4 = vld [vmem:[#allocation10 + $0xc8] sm:$0xff] }
 0x1de   : > { %4404 = vmatprep.subr.bf16.mxu1 %v4403_v8 }
 0x1e1   : > { %4406 = vmatpush3.bf16.msra.mxu1 %v4403_v8  ;;  %v5752_v8 = vpack.c.bf16 %v1440_v4, %v1439_v3  ;;  %v1221_v3 = vrot.slane %v5702_v30, 5  ;;  %v1220_v4 = vrot.slane %v5698_v28, 5 }
 0x1e2   : > { %4408 = vmatprep.subr.bf16.mxu1 %v4407_v11 }
 0x1e3   : > { %4572 = vmatprep.subr.bf16.mxu0 %v5752_v8 }
 0x1e4   : > { %4574 = vmatpush3.bf16.msra.mxu0 %v5752_v8 }
 0x1e5   : > { %4410 = vmatpush3.bf16.msra.mxu1 %v4407_v11  ;;  %v1016_v11 = vld [vmem:[#allocation9 + $0x1e8] sm:$0xff] }
 0x1e6   : > { %4412 = vmatprep.subr.bf16.mxu1 %v4411_v14  ;;  %v4451_v12 = vpack.c.bf16 %v1016_v11, %v1015_v10  ;;  %v1222_v10 = vsel %vm1219_vm4, %v1220_v4, %v1221_v3  ;;  %v1315_v4 = vld [vmem:[#allocation9 + $0x360] sm:$0xff] }
 0x1e9   : > { %4414 = vmatpush3.bf16.msra.mxu1 %v4411_v14  ;;  %v1018_v14 = vld [vmem:[#allocation9 + $0x1f8] sm:$0xff] }
 0x1ea   : > { %4416 = vmatprep.subr.bf16.mxu1 %v4415_v17  ;;  %v4455_v15 = vpack.c.bf16 %v1018_v14, %v1017_v13  ;;  %v1210_v13 = vld [vmem:[#allocation9 + $0x2b8] sm:$0xff] }
 0x1ed   : > { %4418 = vmatpush3.bf16.msra.mxu1 %v4415_v17  ;;  %v1104_v17 = vld [vmem:[#allocation9 + $0x208] sm:$0xff] }
 0x1ee   : > { %4420 = vmatprep.subr.bf16.mxu1 %v4419_v20  ;;  %v4459_v18 = vpack.c.bf16 %v1104_v17, %v1103_v16  ;;  %v1212_v16 = vld [vmem:[#allocation9 + $0x2c8] sm:$0xff] }
 0x1f1   : > { %4422 = vmatpush3.bf16.msra.mxu1 %v4419_v20  ;;  %v1106_v20 = vld [vmem:[#allocation9 + $0x218] sm:$0xff] }
 0x1f2   : > { %4424 = vmatprep.subr.bf16.mxu1 %v4423_v24 }
 0x1f5   : > { %4426 = vmatpush3.bf16.msra.mxu1 %v4423_v24  ;;  %v4463_v24 = vpack.c.bf16 %v1106_v20, %v1105_v19  ;;  %v1214_v19 = vld [vmem:[#allocation9 + $0x2d8] sm:$0xff] }
 0x1f6   : > { %4428 = vmatprep.subr.bf16.mxu1 %v4427_v27 }
 0x1f8   : > { %3743 = vmatmul.mubr.f32.vlgmr.msra.gmra.mrb[4].mxu1 %v5718_v2 }
 0x1f9   : > { %4430 = vmatpush3.bf16.msra.mxu1 %v4427_v27  ;;  %3777 = vmatprep.mubr.f32.mxu1 %v5734_v43  ;;  %v5764_v27 = vsel %vm1119_vm3, %v1120_v22, %v5758_v21  ;;  %v1215_v22 = vld [vmem:[#allocation9 + $0x2e0] sm:$0xff] }
 0x1fa   : > { %4432 = vmatprep.subr.bf16.mxu1 %v4431_v40  ;;  %6373 = vst [vmem:[#allocation19_spill] sm:$0xff] %v5764_v27 }
 0x1fd   : > { %4434 = vmatpush3.bf16.msra.mxu1 %v4431_v40  ;;  %v4471_v40 = vpack.c.bf16 %v1110_v33, %v1109_v36  ;;  %v1303_v33 = vld [vmem:[#allocation9 + $0x300] sm:$0xff] }
 0x1fe   : > { %4436 = vmatprep.subr.bf16.mxu1 %v4435_v50 }
 0x201   : > { %4438 = vmatpush3.bf16.msra.mxu1 %v4435_v50  ;;  %v1115_v50 = vld [vmem:[#allocation9 + $0x260] sm:$0xff] }
 0x202   : > { %4440 = vmatprep.subr.bf16.mxu1 %v4439_v58  ;;  %v4483_v53 = vpack.c.bf16 %v1116_v52, %v1115_v50  ;;  %v1307_v50 = vld [vmem:[#allocation9 + $0x320] sm:$0xff]  ;;  %v1308_v52 = vld [vmem:[#allocation9 + $0x328] sm:$0xff] }
 0x205   : > { %4442 = vmatpush3.bf16.msra.mxu1 %v4439_v58  ;;  %v4487_v58 = vpack.c.bf16 %v1118_v55, %v1117_v54  ;;  %v4531_v54 = vpack.c.bf16 %v1308_v52, %v1307_v50  ;;  %v1309_v55 = vld [vmem:[#allocation9 + $0x330] sm:$0xff]  ;;  %v1602_v50 = vld [vmem:[#allocation10 + $0x120] sm:$0xff]  ;;  %v1603_v52 = vld [vmem:[#allocation10 + $0x128] sm:$0xff] }
 0x206   : > { %4444 = vmatprep.subr.bf16.mxu1 %v4443_v1 }
 0x209   : > { %4446 = vmatpush3.bf16.msra.mxu1 %v4443_v1  ;;  %v1206_v1 = vld [vmem:[#allocation9 + $0x298] sm:$0xff] }
 0x20a   : > { %4448 = vmatprep.subr.bf16.mxu1 %v4447_v9  ;;  %v4495_v5 = vpack.c.bf16 %v1206_v1, %v1205_v62  ;;  %v1313_v62 = vld [vmem:[#allocation9 + $0x350] sm:$0xff]  ;;  %v1314_v1 = vld [vmem:[#allocation9 + $0x358] sm:$0xff] }
 0x20d   : > { %4450 = vmatpush3.bf16.msra.mxu1 %v4447_v9  ;;  %v1208_v9 = vld [vmem:[#allocation9 + $0x2a8] sm:$0xff] }
 0x20e   : > { %4452 = vmatprep.subr.bf16.mxu1 %v4451_v12  ;;  %v4499_v11 = vpack.c.bf16 %v1208_v9, %v1207_v6  ;;  %v1317_v9 = vld [vmem:[#allocation9 + $0x370] sm:$0xff] }
 0x211   : > { %4454 = vmatpush3.bf16.msra.mxu1 %v4451_v12  ;;  %v1209_v12 = vld [vmem:[#allocation9 + $0x2b0] sm:$0xff] }
 0x212   : > { %4456 = vmatprep.subr.bf16.mxu1 %v4455_v15  ;;  %v4503_v14 = vpack.c.bf16 %v1210_v13, %v1209_v12  ;;  %v1441_v12 = vld [vmem:[#allocation10 + $0xd0] sm:$0xff]  ;;  %v1442_v13 = vld [vmem:[#allocation10 + $0xd8] sm:$0xff] }
 0x215   : > { %4458 = vmatpush3.bf16.msra.mxu1 %v4455_v15  ;;  %v1211_v15 = vld [vmem:[#allocation9 + $0x2c0] sm:$0xff] }
 0x216   : > { %4460 = vmatprep.subr.bf16.mxu1 %v4459_v18  ;;  %v4507_v17 = vpack.c.bf16 %v1212_v16, %v1211_v15  ;;  %v1443_v15 = vld [vmem:[#allocation10 + $0xe0] sm:$0xff]  ;;  %v1444_v16 = vld [vmem:[#allocation10 + $0xe8] sm:$0xff] }
 0x218   : > { %3778 = vmatmul.mubr.f32.vlgmr.msra.gmra.mrb[4].mxu1 %v5728_v37 }
 0x219   : > { %4462 = vmatpush3.bf16.msra.mxu1 %v4459_v18  ;;  %3812 = vmatprep.mubr.f32.mxu1 %v5764_v27  ;;  %v1213_v18 = vld [vmem:[#allocation9 + $0x2d0] sm:$0xff] }
 0x21a   : > { %4464 = vmatprep.subr.bf16.mxu1 %v4463_v24  ;;  %v4511_v20 = vpack.c.bf16 %v1214_v19, %v1213_v18  ;;  %v1445_v18 = vld [vmem:[#allocation10 + $0xf0] sm:$0xff]  ;;  %v1446_v19 = vld [vmem:[#allocation10 + $0xf8] sm:$0xff] }
 0x21d   : > { %4466 = vmatpush3.bf16.msra.mxu1 %v4463_v24  ;;  %v1216_v24 = vld [vmem:[#allocation9 + $0x2e8] sm:$0xff] }
 0x21e   : > { %4468 = vmatprep.subr.bf16.mxu1 %v4467_v31  ;;  %v4515_v25 = vpack.c.bf16 %v1216_v24, %v1215_v22  ;;  %v1416_v22 = vld [vmem:[#allocation10 + $0x8] sm:$0xff] }
 0x221   : > { %4470 = vmatpush3.bf16.msra.mxu1 %v4467_v31  ;;  %v1218_v31 = vld [vmem:[#allocation9 + $0x2f8] sm:$0xff] }
 0x222   : > { %4472 = vmatprep.subr.bf16.mxu1 %v4471_v40  ;;  %v4519_v36 = vpack.c.bf16 %v1218_v31, %v1217_v26  ;;  %v1599_v26 = vld [vmem:[#allocation10 + $0x108] sm:$0xff]  ;;  %v1691_v31 = vld [vmem:[#allocation10 + $0x180] sm:$0xff] }
 0x225   : > { %4474 = vmatpush3.bf16.msra.mxu1 %v4471_v40  ;;  %v1304_v40 = vld [vmem:[#allocation9 + $0x308] sm:$0xff] }
 0x226   : > { %4476 = vmatprep.subr.bf16.mxu1 %v4475_v44  ;;  %v4523_v34 = vpack.c.bf16 %v1304_v40, %v1303_v33 }
 0x229   : > { %4478 = vmatpush3.bf16.msra.mxu1 %v4475_v44  ;;  %v1306_v44 = vld [vmem:[#allocation9 + $0x318] sm:$0xff] }
 0x22a   : > { %4480 = vmatprep.subr.bf16.mxu1 %v4479_v49 }
 0x22d   : > { %4482 = vmatpush3.bf16.msra.mxu1 %v4479_v49  ;;  %v4527_v49 = vpack.c.bf16 %v1306_v44, %v1305_v42  ;;  %v1601_v42 = vld [vmem:[#allocation10 + $0x118] sm:$0xff]  ;;  %v1693_v44 = vld [vmem:[#allocation10 + $0x190] sm:$0xff] }
 0x22e   : > { %4484 = vmatprep.subr.bf16.mxu1 %v4483_v53 }
 0x231   : > { %4486 = vmatpush3.bf16.msra.mxu1 %v4483_v53  ;;  %v1322_v53 = vsel %vm1319_vm5, %v1320_v46, %v1321_v45 }
 0x232   : > { %4488 = vmatprep.subr.bf16.mxu1 %v4487_v58 }
 0x235   : > { %4490 = vmatpush3.bf16.msra.mxu1 %v4487_v58  ;;  %v1310_v58 = vld [vmem:[#allocation9 + $0x338] sm:$0xff] }
 0x236   : > { %4492 = vmatprep.subr.bf16.mxu1 %v4491_v61  ;;  %v4535_v30 = vpack.c.bf16 %v1310_v58, %v1309_v55  ;;  %v5803_v58 = vpack.c.bf16 %v1603_v52, %v1602_v50  ;;  %v1417_v52 = vld [vmem:[#allocation10 + $0x10] sm:$0xff] }
 0x238   : > { %3813 = vmatmul.mubr.f32.vlgmr.msra.gmra.mrb[4].mxu1 %v5758_v21 }
 0x239   : > { %4494 = vmatpush3.bf16.msra.mxu1 %v4491_v61  ;;  %3847 = vmatprep.mubr.f32.mxu1 %v1222_v10  ;;  %v4539_v61 = vpack.c.bf16 %v1312_v60, %v1311_v59  ;;  %v1318_v10 = vld [vmem:[#allocation9 + $0x378] sm:$0xff]  ;;  %v1697_v60 = vld [vmem:[#allocation10 + $0x1b0] sm:$0xff] }
 0x23a   : > { %4496 = vmatprep.subr.bf16.mxu1 %v4495_v5  ;;  %v1605_v59 = vld [vmem:[#allocation10 + $0x138] sm:$0xff] }
 0x23d   : > { %4498 = vmatpush3.bf16.msra.mxu1 %v4495_v5  ;;  %v1316_v5 = vld [vmem:[#allocation9 + $0x368] sm:$0xff] }
 0x23e   : > { %4500 = vmatprep.subr.bf16.mxu1 %v4499_v11  ;;  %v4547_v6 = vpack.c.bf16 %v1316_v5, %v1315_v4  ;;  %v1607_v4 = vld [vmem:[#allocation10 + $0x148] sm:$0xff]  ;;  %v1699_v5 = vld [vmem:[#allocation10 + $0x1c0] sm:$0xff] }
 0x241   : > { %4502 = vmatpush3.bf16.msra.mxu1 %v4499_v11  ;;  %v4551_v11 = vpack.c.bf16 %v1318_v10, %v1317_v9 }
 0x242   : > { %4504 = vmatprep.subr.bf16.mxu1 %v4503_v14 }
 0x245   : > { %4506 = vmatpush3.bf16.msra.mxu1 %v4503_v14  ;;  %v5774_v14 = vpack.c.bf16 %v1442_v13, %v1441_v12  ;;  %v1609_v12 = vld [vmem:[#allocation10 + $0x158] sm:$0xff]  ;;  %v1701_v13 = vld [vmem:[#allocation10 + $0x1d0] sm:$0xff] }
 0x246   : > { %4508 = vmatprep.subr.bf16.mxu1 %v4507_v17 }
 0x247   : > { %4576 = vmatprep.subr.bf16.mxu0 %v5774_v14 }
 0x248   : > { %4578 = vmatpush3.bf16.msra.mxu0 %v5774_v14 }
 0x249   : > { %4510 = vmatpush3.bf16.msra.mxu1 %v4507_v17  ;;  %v5778_v17 = vpack.c.bf16 %v1444_v16, %v1443_v15  ;;  %v1702_v15 = vld [vmem:[#allocation10 + $0x1d8] sm:$0xff] }
 0x24a   : > { %4512 = vmatprep.subr.bf16.mxu1 %v4511_v20  ;;  %v5819_v16 = vpack.c.bf16 %v1702_v15, %v1701_v13  ;;  %v1427_v13 = vld [vmem:[#allocation10 + $0x60] sm:$0xff]  ;;  %v1428_v15 = vld [vmem:[#allocation10 + $0x68] sm:$0xff] }
 0x24b   : > { %4580 = vmatprep.subr.bf16.mxu0 %v5778_v17 }
 0x24c   : > { %4582 = vmatpush3.bf16.msra.mxu0 %v5778_v17 }
 0x24d   : > { %4514 = vmatpush3.bf16.msra.mxu1 %v4511_v20  ;;  %v5782_v20 = vpack.c.bf16 %v1446_v19, %v1445_v18  ;;  %v1610_v19 = vld [vmem:[#allocation10 + $0x160] sm:$0xff] }
 0x24e   : > { %4516 = vmatprep.subr.bf16.mxu1 %v4515_v25 }
 0x24f   : > { %4584 = vmatprep.subr.bf16.mxu0 %v5782_v20 }
 0x250   : > { %4586 = vmatpush3.bf16.msra.mxu0 %v5782_v20 }
 0x251   : > { %4518 = vmatpush3.bf16.msra.mxu1 %v4515_v25  ;;  %v1598_v25 = vld [vmem:[#allocation10 + $0x100] sm:$0xff] }
 0x252   : > { %4520 = vmatprep.subr.bf16.mxu1 %v4519_v36  ;;  %v5791_v40 = vpack.c.bf16 %v1599_v26, %v1598_v25  ;;  %v1704_v25 = vld [vmem:[#allocation10 + $0x1e8] sm:$0xff] }
 0x255   : > { %4522 = vmatpush3.bf16.msra.mxu1 %v4519_v36  ;;  %v1692_v36 = vld [vmem:[#allocation10 + $0x188] sm:$0xff] }
 0x256   : > { %4524 = vmatprep.subr.bf16.mxu1 %v4523_v34  ;;  %v5789_v33 = vpack.c.bf16 %v1692_v36, %v1691_v31  ;;  %v1612_v36 = vld [vmem:[#allocation10 + $0x170] sm:$0xff] }
 0x258   : > { %3848 = vmatmul.mubr.f32.vlgmr.msra.gmra.mrb[4].mxu1 %v1221_v3  ;;  %v4543_v3 = vpack.c.bf16 %v1314_v1, %v1313_v62 }
 0x259   : > { %4526 = vmatpush3.bf16.msra.mxu1 %v4523_v34  ;;  %3882 = vmatprep.mubr.f32.mxu1 %v1322_v53  ;;  %v1600_v34 = vld [vmem:[#allocation10 + $0x110] sm:$0xff]  ;;  %v1695_v53 = vld [vmem:[#allocation10 + $0x1a0] sm:$0xff] }
 0x25a   : > { %4528 = vmatprep.subr.bf16.mxu1 %v4527_v49 }
 0x25d   : > { %4530 = vmatpush3.bf16.msra.mxu1 %v4527_v49  ;;  %v5797_v49 = vpack.c.bf16 %v1601_v42, %v1600_v34  ;;  %v1613_v34 = vld [vmem:[#allocation10 + $0x178] sm:$0xff]  ;;  %v1705_v42 = vld [vmem:[#allocation10 + $0x1f0] sm:$0xff] }
 0x25e   : > { %4532 = vmatprep.subr.bf16.mxu1 %v4531_v54  ;;  %v5833_v50 = vpack.c.bf16 %v1613_v34, %v1612_v36  ;;  %v1885_v36 = vld [vmem:[#allocation10 + $0x280] sm:$0xff]  ;;  %v1886_v34 = vld [vmem:[#allocation10 + $0x288] sm:$0xff] }
 0x261   : > { %4534 = vmatpush3.bf16.msra.mxu1 %v4531_v54  ;;  %v1696_v54 = vld [vmem:[#allocation10 + $0x1a8] sm:$0xff] }
 0x262   : > { %4536 = vmatprep.subr.bf16.mxu1 %v4535_v30  ;;  %v5801_v55 = vpack.c.bf16 %v1696_v54, %v1695_v53  ;;  %v1418_v53 = vld [vmem:[#allocation10 + $0x18] sm:$0xff] }
 0x263   : > { %v5842_v54 = vpack.c.bf16 %v1418_v53, %v1417_v52  ;;  %v5881_v52 = vpack.c.bf16 %v1886_v34, %v1885_v36  ;;  %v5935_v34 = vld [vmem:[%s5618_s20 + $0x10] sm:$0xff] }
 0x265   : > { %4538 = vmatpush3.bf16.msra.mxu1 %v4535_v30  ;;  %v1604_v30 = vld [vmem:[#allocation10 + $0x130] sm:$0xff] }
 0x266   : > { %4540 = vmatprep.subr.bf16.mxu1 %v4539_v61  ;;  %v5809_v1 = vpack.c.bf16 %v1605_v59, %v1604_v30  ;;  %v1419_v30 = vld [vmem:[#allocation10 + $0x20] sm:$0xff]  ;;  %v1420_v59 = vld [vmem:[#allocation10 + $0x28] sm:$0xff] }
 0x269   : > { %4542 = vmatpush3.bf16.msra.mxu1 %v4539_v61  ;;  %v1698_v61 = vld [vmem:[#allocation10 + $0x1b8] sm:$0xff] }
 0x26a   : > { %4544 = vmatprep.subr.bf16.mxu1 %v4543_v3  ;;  %v5807_v62 = vpack.c.bf16 %v1698_v61, %v1697_v60  ;;  %v5847_v60 = vld [vmem:[%s5618_s20 + $0x8] sm:$0xff]  ;;  %v1423_v61 = vld [vmem:[#allocation10 + $0x40] sm:$0xff] }
 0x26b   : > { %6374 = vst [vmem:[#allocation20_spill] sm:$0xff] %v5847_v60 }
 0x26d   : > { %4546 = vmatpush3.bf16.msra.mxu1 %v4543_v3  ;;  %v1606_v3 = vld [vmem:[#allocation10 + $0x140] sm:$0xff] }
 0x26e   : > { %4548 = vmatprep.subr.bf16.mxu1 %v4547_v6  ;;  %v5815_v10 = vpack.c.bf16 %v1607_v4, %v1606_v3  ;;  %v1425_v4 = vld [vmem:[#allocation10 + $0x50] sm:$0xff] }
 0x271   : > { %4550 = vmatpush3.bf16.msra.mxu1 %v4547_v6  ;;  %v1700_v6 = vld [vmem:[#allocation10 + $0x1c8] sm:$0xff] }
 0x272   : > { %4552 = vmatprep.subr.bf16.mxu1 %v4551_v11  ;;  %v5813_v9 = vpack.c.bf16 %v1700_v6, %v1699_v5  ;;  %v3021_v5 = vld [vmem:[%s6337_s4] ss:$0 sm:$0xff] }
 0x275   : > { %4554 = vmatpush3.bf16.msra.mxu1 %v4551_v11  ;;  %v1608_v11 = vld [vmem:[#allocation10 + $0x150] sm:$0xff] }
 0x276   : > { %4876 = vmatprep.subr.bf16.mxu1 %v5789_v33  ;;  %v5821_v18 = vpack.c.bf16 %v1609_v12, %v1608_v11 }
 0x278   : > { %3883 = vmatmul.mubr.f32.vlgmr.msra.gmra.mrb[4].mxu1 %v1321_v45  ;;  %v1694_v45 = vld [vmem:[#allocation10 + $0x198] sm:$0xff] }
 0x279   : > { %2472 = vmatprep.mubr.f32.mxu1 %v5645_v29  ;;  %v1415_v29 = vld [vmem:[#allocation10] sm:$0xff]  ;;  %4878 = vmatpush3.bf16.msra.mxu1 %v5791_v40  ;;  %v5795_v46 = vpack.c.bf16 %v1694_v45, %v1693_v44  ;;  %v1706_v44 = vld [vmem:[#allocation10 + $0x1f8] sm:$0xff] }
 0x27a   : > { %v5786_v24 = vpack.c.bf16 %v1416_v22, %v1415_v29  ;;  %v1611_v29 = vld [vmem:[#allocation10 + $0x168] sm:$0xff]  ;;  %v1703_v22 = vld [vmem:[#allocation10 + $0x1e0] sm:$0xff]  ;;  %v5831_v45 = vpack.c.bf16 %v1706_v44, %v1705_v42 }
 0x27b   : > { %4880 = vmatprep.subr.bf16.mxu1 %v5795_v46  ;;  %v5825_v26 = vpack.c.bf16 %v1704_v25, %v1703_v22  ;;  %v5827_v31 = vpack.c.bf16 %v1611_v29, %v1610_v19  ;;  %v5870_v19 = vpack.c.bf16 %v1428_v15, %v1427_v13  ;;  %v1429_v29 = vld [vmem:[#allocation10 + $0x70] sm:$0xff]  ;;  %v1792_v25 = vld [vmem:[#allocation10 + $0x200] sm:$0xff]  ;;  %v1793_v44 = vld [vmem:[#allocation10 + $0x208] sm:$0xff] }
 0x27c   : > { %4588 = vmatprep.subr.bf16.mxu0 %v5786_v24  ;;  %v5924_v13 = vld [vmem:[%s5618_s20 + $0x18] sm:$0xff] }
 0x27d   : > { %4882 = vmatpush3.bf16.msra.mxu1 %v5797_v49 }
 0x27e   : > { %4884 = vmatprep.subr.bf16.mxu1 %v5801_v55 }
 0x281   : > { %4886 = vmatpush3.bf16.msra.mxu1 %v5803_v58 }
 0x282   : > { %4888 = vmatprep.subr.bf16.mxu1 %v5807_v62 }
 0x285   : > { %4890 = vmatpush3.bf16.msra.mxu1 %v5809_v1 }
 0x286   : > { %4892 = vmatprep.subr.bf16.mxu1 %v5813_v9 }
 0x289   : > { %4894 = vmatpush3.bf16.msra.mxu1 %v5815_v10 }
 0x28a   : > { %4896 = vmatprep.subr.bf16.mxu1 %v5819_v16 }
 0x28d   : > { %4898 = vmatpush3.bf16.msra.mxu1 %v5821_v18 }
 0x28e   : > { %4900 = vmatprep.subr.bf16.mxu1 %v5825_v26 }
 0x291   : > { %4902 = vmatpush3.bf16.msra.mxu1 %v5827_v31 }
 0x292   : > { %4904 = vmatprep.subr.bf16.mxu1 %v5831_v45 }
 0x295   : > { %4906 = vmatpush3.bf16.msra.mxu1 %v5833_v50 }
 0x296   : > { %4908 = vmatprep.subr.bf16.mxu1 %v5737_v47  ;;  %v1421_v47 = vld [vmem:[#allocation10 + $0x30] sm:$0xff] }
 0x298   : > { %2473 = vmatmul.mubr.f32.vlgmr.msra.gmra.mrb[6].mxu1 %v5660_v48  ;;  %v5851_v48 = vpack.c.bf16 %v1420_v59, %v1419_v30 }
 0x299   : > { %4910 = vmatpush3.bf16.msra.mxu1 %v5786_v24  ;;  %2477 = vmatprep.mubr.f32.mxu1 %v5640_v23  ;;  %v1422_v23 = vld [vmem:[#allocation10 + $0x38] sm:$0xff] }
 0x29a   : > { %4912 = vmatprep.subr.bf16.mxu1 %v5739_v51  ;;  %v5855_v51 = vpack.c.bf16 %v1422_v23, %v1421_v47 }
 0x29c   : > { %2478 = vmatmul.mubr.f32.gmra.mrb[8].mxu1 %v5656_v41  ;;  %v1424_v41 = vld [vmem:[#allocation10 + $0x48] sm:$0xff] }
 0x29d   : > { %4914 = vmatpush3.bf16.msra.mxu1 %v5842_v54  ;;  %2547 = vmatprep.mubr.f32.mxu1 %v5847_v60  ;;  %v5859_v3 = vpack.c.bf16 %v1424_v41, %v1423_v61  ;;  %v5898_v61 = vpack.c.bf16 %v1793_v44, %v1792_v25  ;;  %v1797_v25 = vld [vmem:[#allocation10 + $0x228] sm:$0xff]  ;;  %v1891_v44 = vld [vmem:[#allocation10 + $0x2b0] sm:$0xff] }
 0x29e   : > { %4916 = vmatprep.subr.bf16.mxu1 %v5744_v57  ;;  %v1426_v57 = vld [vmem:[#allocation10 + $0x58] sm:$0xff] }
 0x29f   : > { %v5866_v6 = vpack.c.bf16 %v1426_v57, %v1425_v4  ;;  %v1887_v4 = vld [vmem:[#allocation10 + $0x290] sm:$0xff]  ;;  %v1888_v57 = vld [vmem:[#allocation10 + $0x298] sm:$0xff] }
 0x2a1   : > { %4918 = vmatpush3.bf16.msra.mxu1 %v5851_v48 }
 0x2a2   : > { %4920 = vmatprep.subr.bf16.mxu1 %v5748_v0 }
 0x2a5   : > { %4922 = vmatpush3.bf16.msra.mxu1 %v5855_v51 }
 0x2a6   : > { %4924 = vmatprep.subr.bf16.mxu1 %v5752_v8 }
 0x2a9   : > { %4926 = vmatpush3.bf16.msra.mxu1 %v5859_v3 }
 0x2aa   : > { %4928 = vmatprep.subr.bf16.mxu1 %v5774_v14  ;;  %v1430_v14 = vld [vmem:[#allocation10 + $0x78] sm:$0xff] }
 0x2ab   : > { %v5874_v22 = vpack.c.bf16 %v1430_v14, %v1429_v29  ;;  %v1890_v29 = vld [vmem:[#allocation10 + $0x2a8] sm:$0xff]  ;;  %v1796_v14 = vld [vmem:[#allocation10 + $0x220] sm:$0xff] }
 0x2ad   : > { %4930 = vmatpush3.bf16.msra.mxu1 %v5866_v6 }
 0x2ae   : > { %4932 = vmatprep.subr.bf16.mxu1 %v5778_v17 }
 0x2b1   : > { %4934 = vmatpush3.bf16.msra.mxu1 %v5870_v19 }
 0x2b2   : > { %4936 = vmatprep.subr.bf16.mxu1 %v5782_v20 }
 0x2b5   : > { %4938 = vmatpush3.bf16.msra.mxu1 %v5874_v22 }
 0x2b6   : > { %4940 = vmatprep.subr.bf16.mxu1 %v5881_v52 }
 0x34b   : > { %v3884_v0 = vpop.f32.mrb[4].mxu1 }
 0x34c   : > { %v1410_v11 = vadd.f32 %v3884_v0, %v3021_v5  ;;  %v1391_v12 = vpop.f32.mrb[5].mxu1  ;;  %v1795_v0 = vld [vmem:[#allocation10 + $0x218] sm:$0xff] }
 0x34d   : > { %v1409_v8 = vadd.f32 %v3021_v5, %v1391_v12  ;;  %v1794_v5 = vld [vmem:[#allocation10 + $0x210] sm:$0xff] }
 0x34e   : > { %1412 = vst [vmem:[#allocation3 + $0xb] sm:$0x3] %v1410_v11  ;;  %v5907_v11 = vld [vmem:[%s5618_s20] sm:$0xff]  ;;  %v5929_v15 = vpack.c.bf16 %v1795_v0, %v1794_v5  ;;  %v1801_v0 = vld [vmem:[#allocation10 + $0x248] sm:$0xff]  ;;  %s2890_s20 = scalar_lea.sflag [#allocation6], %s5614_s21 }
 0x34f   : > { %1411 = vst [vmem:[#allocation3 + $0x3] sm:$0xff] %v1409_v8  ;;  %6375 = vst [vmem:[#allocation21_spill] sm:$0xff] %v5907_v11  ;;  %2548 = vmatmul.mubr.f32.vlgmr.msra.gmra.mrb[10].mxu1 %v5907_v11  ;;  %v1889_v8 = vld [vmem:[#allocation10 + $0x2a0] sm:$0xff] }
 0x350   : > { %4942 = vmatpush3.bf16.msra.mxu1 %v5898_v61  ;;  %2552 = vmatprep.mubr.f32.mxu1 %v5924_v13  ;;  %v5932_v36 = vpack.c.bf16 %v1890_v29, %v1889_v8  ;;  %v1800_v5 = vld [vmem:[#allocation10 + $0x240] sm:$0xff] }
 0x351   : > { %v5958_v29 = vpack.c.bf16 %v1801_v0, %v1800_v5 }
 0x353   : > { %2553 = vmatmul.mubr.f32.gmra.mrb[12].mxu1 %v5935_v34 }
 0x354   : > { %2638 = vmatprep.mubr.f32.mxu1 %v5672_v63 }
 0x356   : > { %v5877_v42 = vld [vmem:[#allocation3] sm:$0xff]  ;;  %v5879_v17 = vld [vmem:[#allocation3 + $0x8] sm:$0xff] }
 0x357   : > { %3917 = vmatprep.mubr.f32.mxu0 %v5877_v42  ;;  %2887 = vst [vmem:[%s5689_s9 + $0x18] sm:$0xff] %v5877_v42  ;;  %2888 = vst [vmem:[%s5689_s9 + $0x38] sm:$0xff] %v5879_v17  ;;  %v1901_v20 = vrot.slane %v5877_v42, 2  ;;  %v6347_v53 = vrot.slane %v5879_v17, 2  ;;  %v2093_v30 = vrot.slane %v5877_v42, 3  ;;  %v6346_v59 = vrot.slane %v5879_v17, 3 }
 0x358   : > { %3918 = vmatmul.mubr.f32.vlgmr.msra.gmra.mrb[8].mxu0 %v5879_v17  ;;  %v2285_v47 = vrot.slane %v5877_v42, 4  ;;  %v6345_v23 = vrot.slane %v5879_v17, 4  ;;  %v6351_v21 = vrot.slane %v5879_v17, 1 }
 0x359   : > { %4590 = vmatpush3.bf16.msra.mxu0 %v5786_v24  ;;  %3952 = vmatprep.mubr.f32.mxu0 %v5698_v28  ;;  %v5903_v41 = vsel %vm610_vm1, %v1901_v20, %v6347_v53  ;;  %v5910_v24 = vpack.c.bf16 %v1888_v57, %v1887_v4  ;;  %v5915_v28 = vsel %vm1019_vm2, %v2093_v30, %v6346_v59  ;;  %v1892_v20 = vld [vmem:[#allocation10 + $0x2b8] sm:$0xff]  ;;  %v1798_v30 = vld [vmem:[#allocation10 + $0x230] sm:$0xff]  ;;  %v1893_v57 = vld [vmem:[#allocation10 + $0x2c0] sm:$0xff] }
 0x35a   : > { %4592 = vmatprep.subr.bf16.mxu0 %v5842_v54  ;;  %v5920_v12 = vsel %vm1119_vm3, %v2285_v47, %v6345_v23  ;;  %v1799_v47 = vld [vmem:[#allocation10 + $0x238] sm:$0xff]  ;;  %v5945_v4 = vpack.c.bf16 %v1892_v20, %v1891_v44  ;;  %v5169_v23 = vld [vmem:[%s5689_s9 + $0x30] sm:$0xff] }
 0x35b   : > { %6376 = vst [vmem:[#allocation22_spill] sm:$0xff] %v5920_v12  ;;  %4944 = vmatprep.subr.bf16.mxu1 %v5910_v24  ;;  %v5950_v63 = vpack.c.bf16 %v1799_v47, %v1798_v30  ;;  %v1803_v44 = vld [vmem:[#allocation10 + $0x258] sm:$0xff]  ;;  %v1897_v47 = vld [vmem:[#allocation10 + $0x2e0] sm:$0xff]  ;;  %v1709_v12 = vrot.slane %v5877_v42, 1  ;;  %v2270_v42 = vld [vmem:[#allocation10 + $0x488] sm:$0xff] }
 0x35c   : > { %4946 = vmatpush3.bf16.msra.mxu1 %v5929_v15  ;;  %v2080_v59 = vld [vmem:[#allocation10 + $0x398] sm:$0xff] }
 0x35d   : > { %4594 = vmatpush3.bf16.msra.mxu0 %v5842_v54  ;;  %4948 = vmatprep.subr.bf16.mxu1 %v5932_v36  ;;  %v5942_v54 = vpack.c.bf16 %v1797_v25, %v1796_v14  ;;  %v1895_v14 = vld [vmem:[#allocation10 + $0x2d0] sm:$0xff] }
 0x35e   : > { %4596 = vmatprep.subr.bf16.mxu0 %v5851_v48  ;;  %v1802_v25 = vld [vmem:[#allocation10 + $0x250] sm:$0xff] }
 0x35f   : > { %v5966_v30 = vpack.c.bf16 %v1803_v44, %v1802_v25  ;;  %v1807_v25 = vld [vmem:[#allocation10 + $0x278] sm:$0xff] }
 0x360   : > { %4950 = vmatpush3.bf16.msra.mxu1 %v5942_v54 }
 0x361   : > { %4598 = vmatpush3.bf16.msra.mxu0 %v5851_v48  ;;  %4952 = vmatprep.subr.bf16.mxu1 %v5945_v4  ;;  %v1894_v48 = vld [vmem:[#allocation10 + $0x2c8] sm:$0xff] }
 0x362   : > { %4600 = vmatprep.subr.bf16.mxu0 %v5855_v51  ;;  %v5953_v8 = vpack.c.bf16 %v1894_v48, %v1893_v57  ;;  %v1804_v57 = vld [vmem:[#allocation10 + $0x260] sm:$0xff]  ;;  %v1805_v48 = vld [vmem:[#allocation10 + $0x268] sm:$0xff] }
 0x363   : > { %v5974_v0 = vpack.c.bf16 %v1805_v48, %v1804_v57  ;;  %v2077_v57 = vld [vmem:[#allocation10 + $0x380] sm:$0xff]  ;;  %v2078_v48 = vld [vmem:[#allocation10 + $0x388] sm:$0xff] }
 0x364   : > { %4954 = vmatpush3.bf16.msra.mxu1 %v5950_v63 }
 0x365   : > { %4602 = vmatpush3.bf16.msra.mxu0 %v5855_v51  ;;  %4956 = vmatprep.subr.bf16.mxu1 %v5953_v8  ;;  %v1896_v51 = vld [vmem:[#allocation10 + $0x2d8] sm:$0xff] }
 0x366   : > { %4604 = vmatprep.subr.bf16.mxu0 %v5859_v3  ;;  %v5961_v20 = vpack.c.bf16 %v1896_v51, %v1895_v14  ;;  %v1899_v14 = vld [vmem:[#allocation10 + $0x2f0] sm:$0xff] }
 0x367   : > { %v1806_v51 = vld [vmem:[#allocation10 + $0x270] sm:$0xff] }
 0x368   : > { %4958 = vmatpush3.bf16.msra.mxu1 %v5958_v29 }
 0x369   : > { %4606 = vmatpush3.bf16.msra.mxu0 %v5859_v3  ;;  %4960 = vmatprep.subr.bf16.mxu1 %v5961_v20  ;;  %v1898_v3 = vld [vmem:[#allocation10 + $0x2e8] sm:$0xff] }
 0x36a   : > { %4608 = vmatprep.subr.bf16.mxu0 %v5866_v6  ;;  %v5969_v5 = vpack.c.bf16 %v1898_v3, %v1897_v47  ;;  %v5982_v47 = vpack.c.bf16 %v1807_v25, %v1806_v51  ;;  %v1985_v3 = vld [vmem:[#allocation10 + $0x308] sm:$0xff]  ;;  %v1987_v51 = vld [vmem:[#allocation10 + $0x318] sm:$0xff]  ;;  %v2079_v25 = vld [vmem:[#allocation10 + $0x390] sm:$0xff] }
 0x36c   : > { %4962 = vmatpush3.bf16.msra.mxu1 %v5966_v30 }
 0x36d   : > { %4610 = vmatpush3.bf16.msra.mxu0 %v5866_v6  ;;  %4964 = vmatprep.subr.bf16.mxu1 %v5969_v5  ;;  %v1900_v6 = vld [vmem:[#allocation10 + $0x2f8] sm:$0xff] }
 0x36e   : > { %4612 = vmatprep.subr.bf16.mxu0 %v5870_v19  ;;  %v5977_v44 = vpack.c.bf16 %v1900_v6, %v1899_v14  ;;  %v5987_v14 = vpack.c.bf16 %v2078_v48, %v2077_v57  ;;  %v1986_v6 = vld [vmem:[#allocation10 + $0x310] sm:$0xff]  ;;  %v1991_v57 = vld [vmem:[#allocation10 + $0x338] sm:$0xff] }
 0x36f   : > { %v2083_v48 = vld [vmem:[#allocation10 + $0x3b0] sm:$0xff] }
 0x370   : > { %4966 = vmatpush3.bf16.msra.mxu1 %v5974_v0 }
 0x371   : > { %4614 = vmatpush3.bf16.msra.mxu0 %v5870_v19  ;;  %4968 = vmatprep.subr.bf16.mxu1 %v5977_v44  ;;  %v1984_v19 = vld [vmem:[#allocation10 + $0x300] sm:$0xff] }
 0x372   : > { %4616 = vmatprep.subr.bf16.mxu0 %v5874_v22 }
 0x374   : > { %4970 = vmatpush3.bf16.msra.mxu1 %v5982_v47 }
 0x375   : > { %4618 = vmatpush3.bf16.msra.mxu0 %v5874_v22  ;;  %v5992_v22 = vpack.c.bf16 %v1985_v3, %v1984_v19  ;;  %4972 = vmatprep.subr.bf16.mxu1 %v5987_v14  ;;  %v1989_v19 = vld [vmem:[#allocation10 + $0x328] sm:$0xff] }
 0x376   : > { %4620 = vmatprep.subr.bf16.mxu0 %v5791_v40  ;;  %v2082_v3 = vld [vmem:[#allocation10 + $0x3a8] sm:$0xff] }
 0x377   : > { %2639 = vmatmul.mubr.f32.vlgmr.msra.gmra.mrb[14].mxu1 %v5683_v35  ;;  %v2081_v35 = vld [vmem:[#allocation10 + $0x3a0] sm:$0xff] }
 0x378   : > { %3953 = vmatmul.mubr.f32.vlgmr.msra.gmra.mrb[8].mxu0 %v5169_v23  ;;  %4974 = vmatpush3.bf16.msra.mxu1 %v5992_v22  ;;  %v5997_v23 = vpack.c.bf16 %v2080_v59, %v2079_v25  ;;  %v6007_v59 = vpack.c.bf16 %v2082_v3, %v2081_v35  ;;  %v1993_v25 = vld [vmem:[#allocation10 + $0x348] sm:$0xff] }
 0x379   : > { %4622 = vmatpush3.bf16.msra.mxu0 %v5791_v40  ;;  %3987 = vmatprep.mubr.f32.mxu0 %v5712_v39  ;;  %v6002_v39 = vpack.c.bf16 %v1987_v51, %v1986_v6  ;;  %v1988_v40 = vld [vmem:[#allocation10 + $0x320] sm:$0xff]  ;;  %v2084_v6 = vld [vmem:[#allocation10 + $0x3b8] sm:$0xff] }
 0x37a   : > { %4624 = vmatprep.subr.bf16.mxu0 %v5797_v49  ;;  %2643 = vmatprep.mubr.f32.mxu1 %v5664_v56  ;;  %v6011_v56 = vpack.c.bf16 %v1989_v19, %v1988_v40  ;;  %v6015_v51 = vpack.c.bf16 %v2084_v6, %v2083_v48  ;;  %v2085_v40 = vld [vmem:[#allocation10 + $0x3c0] sm:$0xff]  ;;  %v2086_v19 = vld [vmem:[#allocation10 + $0x3c8] sm:$0xff]  ;;  %v2088_v48 = vld [vmem:[#allocation10 + $0x3d8] sm:$0xff] }
 0x37b   : > { %4976 = vmatprep.subr.bf16.mxu1 %v5997_v23  ;;  %2644 = vmatmul.mubr.f32.gmra.mrb[16].mxu1 %v5679_v32  ;;  %v6023_v35 = vpack.c.bf16 %v2086_v19, %v2085_v40  ;;  %v2090_v19 = vld [vmem:[#allocation10 + $0x3e8] sm:$0xff] }
 0x37c   : > { %4978 = vmatpush3.bf16.msra.mxu1 %v6002_v39 }
 0x37d   : > { %4626 = vmatpush3.bf16.msra.mxu0 %v5797_v49  ;;  %4980 = vmatprep.subr.bf16.mxu1 %v6007_v59  ;;  %v1990_v49 = vld [vmem:[#allocation10 + $0x330] sm:$0xff] }
 0x37e   : > { %4628 = vmatprep.subr.bf16.mxu0 %v5803_v58  ;;  %v6019_v32 = vpack.c.bf16 %v1991_v57, %v1990_v49  ;;  %v1995_v49 = vld [vmem:[#allocation10 + $0x358] sm:$0xff]  ;;  %v2087_v57 = vld [vmem:[#allocation10 + $0x3d0] sm:$0xff] }
 0x37f   : > { %v6031_v6 = vpack.c.bf16 %v2088_v48, %v2087_v57  ;;  %v2092_v48 = vld [vmem:[#allocation10 + $0x3f8] sm:$0xff] }
 0x380   : > { %4982 = vmatpush3.bf16.msra.mxu1 %v6011_v56 }
 0x381   : > { %4630 = vmatpush3.bf16.msra.mxu0 %v5803_v58  ;;  %4984 = vmatprep.subr.bf16.mxu1 %v6015_v51  ;;  %v1992_v58 = vld [vmem:[#allocation10 + $0x340] sm:$0xff] }
 0x382   : > { %4632 = vmatprep.subr.bf16.mxu0 %v5809_v1  ;;  %v6027_v3 = vpack.c.bf16 %v1993_v25, %v1992_v58  ;;  %v1997_v58 = vld [vmem:[#allocation10 + $0x368] sm:$0xff]  ;;  %v2089_v25 = vld [vmem:[#allocation10 + $0x3e0] sm:$0xff] }
 0x383   : > { %v6039_v53 = vpack.c.bf16 %v2090_v19, %v2089_v25  ;;  %v2269_v19 = vld [vmem:[#allocation10 + $0x480] sm:$0xff] }
 0x384   : > { %4986 = vmatpush3.bf16.msra.mxu1 %v6019_v32 }
 0x385   : > { %4634 = vmatpush3.bf16.msra.mxu0 %v5809_v1  ;;  %4988 = vmatprep.subr.bf16.mxu1 %v6023_v35  ;;  %v1994_v1 = vld [vmem:[#allocation10 + $0x350] sm:$0xff] }
 0x386   : > { %4636 = vmatprep.subr.bf16.mxu0 %v5815_v10  ;;  %v6035_v40 = vpack.c.bf16 %v1995_v49, %v1994_v1  ;;  %v1999_v1 = vld [vmem:[#allocation10 + $0x378] sm:$0xff]  ;;  %v2091_v49 = vld [vmem:[#allocation10 + $0x3f0] sm:$0xff] }
 0x387   : > { %v6049_v25 = vpack.c.bf16 %v2092_v48, %v2091_v49  ;;  %v1711_v49 = vsel %vm416_vm0, %v1709_v12, %v6351_v21  ;;  %v2754_v48 = vld [vmem:[#allocation10 + $0x400] sm:$0xff] }
 0x388   : > { %4990 = vmatpush3.bf16.msra.mxu1 %v6027_v3 }
 0x389   : > { %4638 = vmatpush3.bf16.msra.mxu0 %v5815_v10  ;;  %4992 = vmatprep.subr.bf16.mxu1 %v6031_v6  ;;  %v1996_v10 = vld [vmem:[#allocation10 + $0x360] sm:$0xff] }
 0x38a   : > { %4640 = vmatprep.subr.bf16.mxu0 %v5821_v18  ;;  %v6043_v57 = vpack.c.bf16 %v1997_v58, %v1996_v10  ;;  %v2670_v10 = vrot.slane %v5847_v60, 3  ;;  %v2671_v58 = vrot.slane %v5924_v13, 3  ;;  %v2755_v60 = vld [vmem:[#allocation10 + $0x408] sm:$0xff] }
 0x38c   : > { %4994 = vmatpush3.bf16.msra.mxu1 %v6035_v40  ;;  %v2672_v27 = vsel %vm1019_vm2, %v2670_v10, %v2671_v58  ;;  %v2274_v10 = vld [vmem:[#allocation10 + $0x4a8] sm:$0xff] }
 0x38d   : > { %4642 = vmatpush3.bf16.msra.mxu0 %v5821_v18  ;;  %4996 = vmatprep.subr.bf16.mxu1 %v6039_v53  ;;  %v1998_v18 = vld [vmem:[#allocation10 + $0x370] sm:$0xff] }
 0x38e   : > { %4644 = vmatprep.subr.bf16.mxu0 %v5827_v31  ;;  %2741 = vmatprep.mubr.f32.mxu1 %v2672_v27  ;;  %v2273_v27 = vld [vmem:[#allocation10 + $0x4a0] sm:$0xff] }
 0x390   : > { %4998 = vmatpush3.bf16.msra.mxu1 %v6043_v57 }
 0x391   : > { %4646 = vmatpush3.bf16.msra.mxu0 %v5827_v31  ;;  %v6053_v31 = vpack.c.bf16 %v1999_v1, %v1998_v18  ;;  %5000 = vmatprep.subr.bf16.mxu1 %v6049_v25  ;;  %v2667_v18 = vrot.slane %v5907_v11, 3  ;;  %v2668_v1 = vrot.slane %v5935_v34, 3  ;;  %v2765_v11 = vld [vmem:[#allocation10 + $0x458] sm:$0xff] }
 0x392   : > { %4648 = vmatprep.subr.bf16.mxu0 %v5833_v50 }
 0x393   : > { %v2669_v12 = vsel %vm1019_vm2, %v2667_v18, %v2668_v1  ;;  %v6083_v18 = vpack.c.bf16 %v2274_v10, %v2273_v27  ;;  %v2278_v27 = vld [vmem:[#allocation10 + $0x4c8] sm:$0xff] }
 0x394   : > { %5002 = vmatpush3.bf16.msra.mxu1 %v6053_v31 }
 0x395   : > { %4650 = vmatpush3.bf16.msra.mxu0 %v5833_v50  ;;  %v6063_v50 = vpack.c.bf16 %v2270_v42, %v2269_v19  ;;  %v2271_v19 = vld [vmem:[#allocation10 + $0x490] sm:$0xff]  ;;  %v2272_v42 = vld [vmem:[#allocation10 + $0x498] sm:$0xff] }
 0x396   : > { %4652 = vmatprep.subr.bf16.mxu0 %v5789_v33  ;;  %v6075_v21 = vpack.c.bf16 %v2272_v42, %v2271_v19  ;;  %v2276_v19 = vld [vmem:[#allocation10 + $0x4b8] sm:$0xff] }
 0x397   : > { %5035 = vmatprep.subr.bf16.mxu1 %v6063_v50  ;;  %2742 = vmatmul.mubr.f32.vlgmr.msra.gmra.mrb[18].mxu1 %v2669_v12  ;;  %v2759_v12 = vld [vmem:[#allocation10 + $0x428] sm:$0xff] }
 0x398   : > { %3988 = vmatmul.mubr.f32.vlgmr.msra.gmra.mrb[8].mxu0 %v5706_v38  ;;  %v6069_v38 = vpack.c.bf16 %v2755_v60, %v2754_v48  ;;  %2746 = vmatprep.mubr.f32.mxu1 %v2671_v58  ;;  %v2758_v48 = vld [vmem:[#allocation10 + $0x420] sm:$0xff] }
 0x399   : > { %4654 = vmatpush3.bf16.msra.mxu0 %v5789_v33  ;;  %4022 = vmatprep.mubr.f32.mxu0 %v1711_v49  ;;  %v2756_v33 = vld [vmem:[#allocation10 + $0x410] sm:$0xff]  ;;  %v2757_v49 = vld [vmem:[#allocation10 + $0x418] sm:$0xff]  ;;  %v6086_v58 = vpack.c.bf16 %v2759_v12, %v2758_v48  ;;  %v2762_v48 = vld [vmem:[#allocation10 + $0x440] sm:$0xff] }
 0x39a   : > { %4656 = vmatprep.subr.bf16.mxu0 %v5795_v46  ;;  %5043 = vmatpush3.bf16.msra.mxu1 %v6069_v38  ;;  %v6078_v60 = vpack.c.bf16 %v2757_v49, %v2756_v33  ;;  %v2761_v33 = vld [vmem:[#allocation10 + $0x438] sm:$0xff]  ;;  %v2763_v12 = vld [vmem:[#allocation10 + $0x448] sm:$0xff] }
 0x39b   : > { %5036 = vmatprep.subr.bf16.mxu1 %v6075_v21  ;;  %2747 = vmatmul.mubr.f32.gmra.mrb[20].mxu1 %v2668_v1  ;;  %v2760_v1 = vld [vmem:[#allocation10 + $0x430] sm:$0xff] }
 0x39c   : > { %v6094_v49 = vpack.c.bf16 %v2761_v33, %v2760_v1  ;;  %v2764_v33 = vld [vmem:[#allocation10 + $0x450] sm:$0xff] }
 0x39d   : > { %4658 = vmatpush3.bf16.msra.mxu0 %v5795_v46  ;;  %v2275_v46 = vld [vmem:[#allocation10 + $0x4b0] sm:$0xff] }
 0x39e   : > { %4660 = vmatprep.subr.bf16.mxu0 %v5801_v55  ;;  %5044 = vmatpush3.bf16.msra.mxu1 %v6078_v60  ;;  %v6091_v42 = vpack.c.bf16 %v2276_v19, %v2275_v46  ;;  %v6102_v46 = vpack.c.bf16 %v2763_v12, %v2762_v48  ;;  %v2280_v19 = vld [vmem:[#allocation10 + $0x4d8] sm:$0xff]  ;;  %v2766_v12 = vld [vmem:[#allocation10 + $0x460] sm:$0xff] }
 0x39f   : > { %5037 = vmatprep.subr.bf16.mxu1 %v6083_v18 }
 0x3a1   : > { %4662 = vmatpush3.bf16.msra.mxu0 %v5801_v55  ;;  %v2277_v55 = vld [vmem:[#allocation10 + $0x4c0] sm:$0xff] }
 0x3a2   : > { %4664 = vmatprep.subr.bf16.mxu0 %v5807_v62  ;;  %5045 = vmatpush3.bf16.msra.mxu1 %v6086_v58  ;;  %v6099_v10 = vpack.c.bf16 %v2278_v27, %v2277_v55  ;;  %v6110_v55 = vpack.c.bf16 %v2765_v11, %v2764_v33  ;;  %v2282_v27 = vld [vmem:[#allocation10 + $0x4e8] sm:$0xff]  ;;  %v2284_v11 = vld [vmem:[#allocation10 + $0x4f8] sm:$0xff]  ;;  %v2768_v33 = vld [vmem:[#allocation10 + $0x470] sm:$0xff] }
 0x3a3   : > { %5038 = vmatprep.subr.bf16.mxu1 %v6091_v42 }
 0x3a4   : > { %6377 = vst [vmem:[#allocation23_spill] sm:$0xff] %v6099_v10 }
 0x3a5   : > { %4666 = vmatpush3.bf16.msra.mxu0 %v5807_v62  ;;  %v2279_v62 = vld [vmem:[#allocation10 + $0x4d0] sm:$0xff] }
 0x3a6   : > { %4668 = vmatprep.subr.bf16.mxu0 %v5813_v9  ;;  %5046 = vmatpush3.bf16.msra.mxu1 %v6094_v49  ;;  %v6107_v1 = vpack.c.bf16 %v2280_v19, %v2279_v62 }
 0x3a7   : > { %5039 = vmatprep.subr.bf16.mxu1 %v6099_v10  ;;  %v2767_v10 = vld [vmem:[#allocation10 + $0x468] sm:$0xff] }
 0x3a8   : > { %6378 = vst [vmem:[#allocation24_spill] sm:$0xff] %v6107_v1  ;;  %v6118_v62 = vpack.c.bf16 %v2767_v10, %v2766_v12  ;;  %v6379_v10 = vrot.slane %v5879_v17, 1  ;;  %v6388_v12 = vrot.slane %v5879_v17, 4 }
 0x3a9   : > { %4670 = vmatpush3.bf16.msra.mxu0 %v5813_v9  ;;  %v2281_v9 = vld [vmem:[#allocation10 + $0x4e0] sm:$0xff] }
 0x3aa   : > { %4672 = vmatprep.subr.bf16.mxu0 %v5819_v16  ;;  %5047 = vmatpush3.bf16.msra.mxu1 %v6102_v46  ;;  %v6115_v48 = vpack.c.bf16 %v2282_v27, %v2281_v9  ;;  %v2771_v27 = vrot.slane %v5935_v34, 4 }
 0x3ab   : > { %5040 = vmatprep.subr.bf16.mxu1 %v6107_v1  ;;  %v2769_v1 = vld [vmem:[#allocation10 + $0x478] sm:$0xff] }
 0x3ac   : > { %v6126_v9 = vpack.c.bf16 %v2769_v1, %v2768_v33 }
 0x3ad   : > { %4674 = vmatpush3.bf16.msra.mxu0 %v5819_v16  ;;  %v2283_v16 = vld [vmem:[#allocation10 + $0x4f0] sm:$0xff] }
 0x3ae   : > { %4676 = vmatprep.subr.bf16.mxu0 %v5825_v26  ;;  %5048 = vmatpush3.bf16.msra.mxu1 %v6110_v55  ;;  %v6123_v19 = vpack.c.bf16 %v2284_v11, %v2283_v16 }
 0x3af   : > { %5041 = vmatprep.subr.bf16.mxu1 %v6115_v48 }
 0x3b1   : > { %4678 = vmatpush3.bf16.msra.mxu0 %v5825_v26  ;;  %v2774_v26 = vrot.slane %v5924_v13, 4 }
 0x3b2   : > { %4680 = vmatprep.subr.bf16.mxu0 %v5831_v45  ;;  %5049 = vmatpush3.bf16.msra.mxu1 %v6118_v62 }
 0x3b3   : > { %5042 = vmatprep.subr.bf16.mxu1 %v6123_v19  ;;  %2849 = vmatprep.mubr.f32.mxu1 %v2774_v26 }
 0x3b5   : > { %4682 = vmatpush3.bf16.msra.mxu0 %v5831_v45 }
 0x3b6   : > { %4684 = vmatprep.subr.bf16.mxu0 %v5898_v61  ;;  %5050 = vmatpush3.bf16.msra.mxu1 %v6126_v9 }
 0x3b8   : > { %4023 = vmatmul.mubr.f32.vlgmr.msra.gmra.mrb[8].mxu0 %v6379_v10 }
 0x3b9   : > { %4686 = vmatpush3.bf16.msra.mxu0 %v5898_v61  ;;  %4057 = vmatprep.mubr.f32.mxu0 %v5724_v7  ;;  %v3482_v7 = vpop.f32.mrb[6].mxu1 }
 0x3ba   : > { %4688 = vmatprep.subr.bf16.mxu0 %v5929_v15  ;;  %2850 = vmatmul.mubr.f32.vlgmr.msra.gmra.mrb[22].mxu1 %v2771_v27 }
 0x3bd   : > { %4690 = vmatpush3.bf16.msra.mxu0 %v5929_v15 }
 0x3be   : > { %4692 = vmatprep.subr.bf16.mxu0 %v5942_v54 }
 0x3c1   : > { %4694 = vmatpush3.bf16.msra.mxu0 %v5942_v54 }
 0x3c2   : > { %4696 = vmatprep.subr.bf16.mxu0 %v5950_v63 }
 0x3c5   : > { %4698 = vmatpush3.bf16.msra.mxu0 %v5950_v63 }
 0x3c6   : > { %4700 = vmatprep.subr.bf16.mxu0 %v5958_v29 }
 0x3c9   : > { %4702 = vmatpush3.bf16.msra.mxu0 %v5958_v29  ;;  %v6382_v29 = vld [vmem:[#allocation19_spill] sm:$0xff] }
 0x3ca   : > { %4704 = vmatprep.subr.bf16.mxu0 %v5966_v30 }
 0x3cd   : > { %4706 = vmatpush3.bf16.msra.mxu0 %v5966_v30 }
 0x3ce   : > { %4708 = vmatprep.subr.bf16.mxu0 %v5974_v0 }
 0x3d1   : > { %4710 = vmatpush3.bf16.msra.mxu0 %v5974_v0 }
 0x3d2   : > { %4712 = vmatprep.subr.bf16.mxu0 %v5982_v47 }
 0x3d5   : > { %4714 = vmatpush3.bf16.msra.mxu0 %v5982_v47 }
 0x3d6   : > { %4716 = vmatprep.subr.bf16.mxu0 %v5881_v52 }
 0x3d8   : > { %4058 = vmatmul.mubr.f32.vlgmr.msra.gmra.mrb[8].mxu0 %v5718_v2  ;;  %v6380_v2 = vrot.slane %v5879_v17, 2 }
 0x3d9   : > { %4718 = vmatpush3.bf16.msra.mxu0 %v5881_v52  ;;  %4092 = vmatprep.mubr.f32.mxu0 %v5903_v41 }
 0x3da   : > { %4720 = vmatprep.subr.bf16.mxu0 %v5910_v24 }
 0x3dd   : > { %4722 = vmatpush3.bf16.msra.mxu0 %v5910_v24 }
 0x3de   : > { %4724 = vmatprep.subr.bf16.mxu0 %v5932_v36 }
 0x3e1   : > { %4726 = vmatpush3.bf16.msra.mxu0 %v5932_v36 }
 0x3e2   : > { %4728 = vmatprep.subr.bf16.mxu0 %v5945_v4 }
 0x3e5   : > { %4730 = vmatpush3.bf16.msra.mxu0 %v5945_v4 }
 0x3e6   : > { %4732 = vmatprep.subr.bf16.mxu0 %v5953_v8 }
 0x3e9   : > { %4734 = vmatpush3.bf16.msra.mxu0 %v5953_v8  ;;  %v6381_v8 = vrot.slane %v5879_v17, 3 }
 0x3ea   : > { %4736 = vmatprep.subr.bf16.mxu0 %v5961_v20 }
 0x3ed   : > { %4738 = vmatpush3.bf16.msra.mxu0 %v5961_v20 }
 0x3ee   : > { %4740 = vmatprep.subr.bf16.mxu0 %v5969_v5 }
 0x3f1   : > { %4742 = vmatpush3.bf16.msra.mxu0 %v5969_v5 }
 0x3f2   : > { %4744 = vmatprep.subr.bf16.mxu0 %v5977_v44 }
 0x3f5   : > { %4746 = vmatpush3.bf16.msra.mxu0 %v5977_v44 }
 0x3f6   : > { %4748 = vmatprep.subr.bf16.mxu0 %v5992_v22 }
 0x3f8   : > { %4093 = vmatmul.mubr.f32.vlgmr.msra.gmra.mrb[8].mxu0 %v6380_v2 }
 0x3f9   : > { %4750 = vmatpush3.bf16.msra.mxu0 %v5992_v22  ;;  %4127 = vmatprep.mubr.f32.mxu0 %v5734_v43  ;;  %v3483_v43 = vpop.f32.mrb[7].mxu1  ;;  %v6383_v22 = vld [vmem:[#allocation18_spill] sm:$0xff] }
 0x3fa   : > { %4752 = vmatprep.subr.bf16.mxu0 %v6002_v39  ;;  %v3484_v45 = vadd.f32 %v3483_v43, %v3482_v7  ;;  %v3485_v52 = vpop.f32.mrb[8].mxu1 }
 0x3fb   : > { %v3486_v61 = vpop.f32.mrb[9].mxu1 }
 0x3fc   : > { %v3487_v41 = vadd.f32 %v3486_v61, %v3485_v52 }
 0x3fd   : > { %4754 = vmatpush3.bf16.msra.mxu0 %v6002_v39  ;;  %v6385_v39 = vld [vmem:[#allocation23_spill] sm:$0xff] }
 0x3fe   : > { %4756 = vmatprep.subr.bf16.mxu0 %v6011_v56 }
 0x401   : > { %4758 = vmatpush3.bf16.msra.mxu0 %v6011_v56 }
 0x402   : > { %4760 = vmatprep.subr.bf16.mxu0 %v6019_v32 }
 0x405   : > { %4762 = vmatpush3.bf16.msra.mxu0 %v6019_v32 }
 0x406   : > { %4764 = vmatprep.subr.bf16.mxu0 %v6027_v3 }
 0x409   : > { %4766 = vmatpush3.bf16.msra.mxu0 %v6027_v3 }
 0x40a   : > { %4768 = vmatprep.subr.bf16.mxu0 %v6035_v40 }
 0x40d   : > { %4770 = vmatpush3.bf16.msra.mxu0 %v6035_v40 }
 0x40e   : > { %4772 = vmatprep.subr.bf16.mxu0 %v6043_v57 }
 0x411   : > { %4774 = vmatpush3.bf16.msra.mxu0 %v6043_v57 }
 0x412   : > { %4776 = vmatprep.subr.bf16.mxu0 %v6053_v31 }
 0x415   : > { %4778 = vmatpush3.bf16.msra.mxu0 %v6053_v31 }
 0x416   : > { %4780 = vmatprep.subr.bf16.mxu0 %v5987_v14 }
 0x418   : > { %4128 = vmatmul.mubr.f32.vlgmr.msra.gmra.mrb[8].mxu0 %v5728_v37 }
 0x419   : > { %4782 = vmatpush3.bf16.msra.mxu0 %v5987_v14  ;;  %4162 = vmatprep.mubr.f32.mxu0 %v5915_v28 }
 0x41a   : > { %4784 = vmatprep.subr.bf16.mxu0 %v5997_v23 }
 0x41d   : > { %4786 = vmatpush3.bf16.msra.mxu0 %v5997_v23  ;;  %v6384_v23 = vld [vmem:[#allocation22_spill] sm:$0xff] }
 0x41e   : > { %4788 = vmatprep.subr.bf16.mxu0 %v6007_v59 }
 0x421   : > { %4790 = vmatpush3.bf16.msra.mxu0 %v6007_v59  ;;  %v6386_v59 = vld [vmem:[#allocation24_spill] sm:$0xff] }
 0x422   : > { %4792 = vmatprep.subr.bf16.mxu0 %v6015_v51  ;;  %v3520_v37 = vpop.f32.mrb[10].mxu1 }
 0x423   : > { %v3521_v24 = vpop.f32.mrb[11].mxu1 }
 0x424   : > { %v3522_v28 = vadd.f32 %v3521_v24, %v3520_v37 }
 0x425   : > { %4794 = vmatpush3.bf16.msra.mxu0 %v6015_v51 }
 0x426   : > { %4796 = vmatprep.subr.bf16.mxu0 %v6023_v35  ;;  %v2550_v15 = vadd.f32 %v3522_v28, %v3484_v45  ;;  %v3523_v36 = vpop.f32.mrb[12].mxu1 }
 0x427   : > { %v3524_v54 = vpop.f32.mrb[13].mxu1 }
 0x428   : > { %v3525_v4 = vadd.f32 %v3524_v54, %v3523_v36 }
 0x429   : > { %4798 = vmatpush3.bf16.msra.mxu0 %v6023_v35  ;;  %v6387_v35 = vld [vmem:[#allocation20_spill] sm:$0xff] }
 0x42a   : > { %4800 = vmatprep.subr.bf16.mxu0 %v6031_v6  ;;  %v2555_v63 = vadd.f32 %v3525_v4, %v3487_v41  ;;  %v2773_v3 = vrot.slane %v6387_v35, 4 }
 0x42c   : > { %v2775_v31 = vsel %vm1119_vm3, %v2773_v3, %v2774_v26 }
 0x42d   : > { %4802 = vmatpush3.bf16.msra.mxu0 %v6031_v6 }
 0x42e   : > { %4804 = vmatprep.subr.bf16.mxu0 %v6039_v53 }
 0x431   : > { %4806 = vmatpush3.bf16.msra.mxu0 %v6039_v53 }
 0x432   : > { %4808 = vmatprep.subr.bf16.mxu0 %v6049_v25 }
 0x435   : > { %4810 = vmatpush3.bf16.msra.mxu0 %v6049_v25 }
 0x436   : > { %4812 = vmatprep.subr.bf16.mxu0 %v6069_v38 }
 0x438   : > { %4163 = vmatmul.mubr.f32.vlgmr.msra.gmra.mrb[8].mxu0 %v6381_v8 }
 0x439   : > { %4814 = vmatpush3.bf16.msra.mxu0 %v6069_v38  ;;  %4197 = vmatprep.mubr.f32.mxu0 %v6382_v29 }
 0x43a   : > { %4816 = vmatprep.subr.bf16.mxu0 %v6078_v60 }
 0x43d   : > { %4818 = vmatpush3.bf16.msra.mxu0 %v6078_v60 }
 0x43e   : > { %4820 = vmatprep.subr.bf16.mxu0 %v6086_v58 }
 0x441   : > { %4822 = vmatpush3.bf16.msra.mxu0 %v6086_v58 }
 0x442   : > { %4824 = vmatprep.subr.bf16.mxu0 %v6094_v49 }
 0x445   : > { %4826 = vmatpush3.bf16.msra.mxu0 %v6094_v49 }
 0x446   : > { %4828 = vmatprep.subr.bf16.mxu0 %v6102_v46 }
 0x449   : > { %4830 = vmatpush3.bf16.msra.mxu0 %v6102_v46 }
 0x44a   : > { %4832 = vmatprep.subr.bf16.mxu0 %v6110_v55  ;;  %v3558_v53 = vpop.f32.mrb[14].mxu1 }
 0x44b   : > { %v3559_v20 = vpop.f32.mrb[15].mxu1 }
 0x44c   : > { %v3560_v30 = vadd.f32 %v3559_v20, %v3558_v53 }
 0x44d   : > { %4834 = vmatpush3.bf16.msra.mxu0 %v6110_v55 }
 0x44e   : > { %4836 = vmatprep.subr.bf16.mxu0 %v6118_v62  ;;  %v2649_v5 = vadd.f32 %v3560_v30, %v2550_v15  ;;  %v3561_v0 = vpop.f32.mrb[16].mxu1 }
 0x44f   : > { %v3562_v44 = vpop.f32.mrb[17].mxu1 }
 0x450   : > { %v3563_v47 = vadd.f32 %v3562_v44, %v3561_v0 }
 0x451   : > { %4838 = vmatpush3.bf16.msra.mxu0 %v6118_v62 }
 0x452   : > { %4840 = vmatprep.subr.bf16.mxu0 %v6126_v9  ;;  %v2650_v14 = vadd.f32 %v3563_v47, %v2555_v63 }
 0x455   : > { %4842 = vmatpush3.bf16.msra.mxu0 %v6126_v9 }
 0x456   : > { %4844 = vmatprep.subr.bf16.mxu0 %v6063_v50 }
 0x458   : > { %4198 = vmatmul.mubr.f32.vlgmr.msra.gmra.mrb[8].mxu0 %v6383_v22 }
 0x459   : > { %4846 = vmatpush3.bf16.msra.mxu0 %v6063_v50  ;;  %4232 = vmatprep.mubr.f32.mxu0 %v6384_v23 }
 0x45a   : > { %4848 = vmatprep.subr.bf16.mxu0 %v6075_v21 }
 0x45d   : > { %4850 = vmatpush3.bf16.msra.mxu0 %v6075_v21 }
 0x45e   : > { %4852 = vmatprep.subr.bf16.mxu0 %v6083_v18 }
 0x461   : > { %4854 = vmatpush3.bf16.msra.mxu0 %v6083_v18 }
 0x462   : > { %4856 = vmatprep.subr.bf16.mxu0 %v6091_v42 }
 0x465   : > { %4858 = vmatpush3.bf16.msra.mxu0 %v6091_v42 }
 0x466   : > { %4860 = vmatprep.subr.bf16.mxu0 %v6385_v39 }
 0x469   : > { %4862 = vmatpush3.bf16.msra.mxu0 %v6385_v39 }
 0x46a   : > { %4864 = vmatprep.subr.bf16.mxu0 %v6386_v59  ;;  %v3596_v56 = vpop.f32.mrb[18].mxu1 }
 0x46b   : > { %v3597_v51 = vpop.f32.mrb[19].mxu1 }
 0x46c   : > { %v3598_v32 = vadd.f32 %v3597_v51, %v3596_v56 }
 0x46d   : > { %4866 = vmatpush3.bf16.msra.mxu0 %v6386_v59 }
 0x46e   : > { %4868 = vmatprep.subr.bf16.mxu0 %v6115_v48  ;;  %v2752_v6 = vadd.f32 %v3598_v32, %v2649_v5  ;;  %v3599_v40 = vpop.f32.mrb[20].mxu1 }
 0x46f   : > { %v3600_v57 = vpop.f32.mrb[21].mxu1 }
 0x470   : > { %v3601_v25 = vadd.f32 %v3600_v57, %v3599_v40 }
 0x471   : > { %4870 = vmatpush3.bf16.msra.mxu0 %v6115_v48 }
 0x472   : > { %4872 = vmatprep.subr.bf16.mxu0 %v6123_v19  ;;  %v2753_v1 = vadd.f32 %v3601_v25, %v2650_v14 }
 0x475   : > { %4874 = vmatpush3.bf16.msra.mxu0 %v6123_v19 }
 0x476   : > { %5004 = vmatprep.subr.bf16.mxu0 %v6063_v50  ;;  %v6389_v50 = vld [vmem:[#allocation21_spill] sm:$0xff] }
 0x478   : > { %4233 = vmatmul.mubr.f32.vlgmr.msra.gmra.mrb[8].mxu0 %v6388_v12 }
 0x479   : > { %5006 = vmatpush3.bf16.msra.mxu0 %v6069_v38  ;;  %2844 = vmatprep.mubr.f32.mxu0 %v2775_v31  ;;  %v2770_v38 = vrot.slane %v6389_v50, 4 }
 0x47a   : > { %5008 = vmatprep.subr.bf16.mxu0 %v6075_v21 }
 0x47d   : > { %5010 = vmatpush3.bf16.msra.mxu0 %v6078_v60 }
 0x47e   : > { %5012 = vmatprep.subr.bf16.mxu0 %v6083_v18  ;;  %v2772_v18 = vsel %vm1119_vm3, %v2770_v38, %v2771_v27 }
 0x481   : > { %5014 = vmatpush3.bf16.msra.mxu0 %v6086_v58  ;;  %v3022_v58 = vld [vmem:[%s6339_s6] ss:$0 sm:$0xff] }
 0x482   : > { %5016 = vmatprep.subr.bf16.mxu0 %v6091_v42 }
 0x485   : > { %5018 = vmatpush3.bf16.msra.mxu0 %v6094_v49 }
 0x486   : > { %5020 = vmatprep.subr.bf16.mxu0 %v6385_v39 }
 0x489   : > { %5022 = vmatpush3.bf16.msra.mxu0 %v6102_v46 }
 0x48a   : > { %5024 = vmatprep.subr.bf16.mxu0 %v6386_v59 }
 0x48d   : > { %5026 = vmatpush3.bf16.msra.mxu0 %v6110_v55  ;;  %v3637_v21 = vpop.f32.mrb[22].mxu1 }
 0x48e   : > { %5028 = vmatprep.subr.bf16.mxu0 %v6115_v48  ;;  %v3638_v17 = vpop.f32.mrb[23].mxu1 }
 0x48f   : > { %v3639_v13 = vadd.f32 %v3638_v17, %v3637_v21 }
 0x491   : > { %5030 = vmatpush3.bf16.msra.mxu0 %v6118_v62  ;;  %v2856_v60 = vadd.f32 %v3639_v13, %v2753_v1 }
 0x492   : > { %5032 = vmatprep.subr.bf16.mxu0 %v6123_v19 }
 0x493   : > { %v2858_v33 = vadd.f32 %v3022_v58, %v2856_v60 }
 0x495   : > { %5034 = vmatpush3.bf16.msra.mxu0 %v6126_v9  ;;  %v2879_v10 = vrot.slane %v2858_v33, 6 }
 0x498   : > { %2845 = vmatmul.mubr.f32.vlgmr.msra.gmra.mrb[10].mxu0 %v2772_v18 }
 0x54b   : > { %v4234_v42 = vpop.f32.mrb[8].mxu0 }
 0x54c   : > { %v2375_v49 = vadd.f32 %v4234_v42, %v3022_v58  ;;  %v2356_v46 = vpop.f32.mrb[9].mxu0 }
 0x54d   : > { %v2374_v55 = vadd.f32 %v3022_v58, %v2356_v46 }
 0x54e   : > { %v2870_v48 = vrot.slane %v2375_v49, 6 }
 0x54f   : > { %v2869_v62 = vrot.slane %v2374_v55, 6 }
 0x551   : > { %v2871_v16 = vsel %vm1319_vm5, %v2869_v62, %v2870_v48  ;;  %2874 = vst [vmem:[%s5689_s9] sm:$0xfc] %v2869_v62 }
 0x552   : > { %2875 = vst [vmem:[%s5689_s9 + $0x20] sm:$0x3f] %v2871_v16 }
 0x56b   : > { %v3634_v34 = vpop.f32.mrb[10].mxu0 }
 0x56c   : > { %v3635_v11 = vpop.f32.mrb[11].mxu0 }
 0x56d   : > { %v3636_v19 = vadd.f32 %v3635_v11, %v3634_v34 }
 0x56f   : > { %v2855_v9 = vadd.f32 %v3636_v19, %v2752_v6 }
 0x571   : > { %v2857_v26 = vadd.f32 %v3022_v58, %v2855_v9 }
 0x573   : > { %v2878_v27 = vrot.slane %v2857_v26, 6 }
 0x575   : > { %v2880_v2 = vsel %vm1319_vm5, %v2878_v27, %v2879_v10  ;;  %2883 = vst [vmem:[%s5689_s9 + $0x8] sm:$0xfc] %v2878_v27 }
 0x576   : > { %2884 = vst [vmem:[%s5689_s9 + $0x28] sm:$0x3f] %v2880_v2 }
 0x577   : > { %5297 = shalt.err (!%p5294_p4)
}
 0x578   : > { %s5298_s9 = scalar_lea.hbm %s6284_s13, 1024  ;;  %s5302_s15 = scalar_lea.hbm %s6340_s7, 2048 }
 0x579   : > { %p5299_p9 = scmp.ne.s32.totalorder %s6284_s13, %s5298_s9  ;;  %p5303_p8 = scmp.lt.u32.totalorder %s6284_s13, %s6340_s7 }
 0x57a   : > { %p5304_p13 = scmp.lt.u32.totalorder %s5302_s15, %s5298_s9  ;;  %p5306_p10 = scmp.lt.u32.totalorder %s5298_s9, %s6284_s13 }
 0x57b   : > { %p5300_p0 = pnand %p5299_p9, %p5566_p5 }
 0x57c   : > { %p5305_p6 = por %p5304_p13, %p5303_p8 }
 0x57d   : > { %p5301_p11 = pneg %p5300_p0 }
 0x57e   : > { %p5307_p3 = por %p5306_p10, %p5305_p6 }
 0x580   : > { %p5308_p7 = pnand %p5307_p3, %p5301_p11 }
 0x582   : > { %5311 = shalt.err (!%p5308_p7)
}
 0x583   : > { %s5370_s17 = smov 512   ;;  %s5371_s16 = smov 32  }
 0x584   : > { %5095 = dma.vmem_to_hbm [thread:$0]  (%p5566_p5), %s6286_s8, 1024, %s6284_s13, %s2890_s20, %s5370_s17, %s5370_s17, %s5371_s16  }
 0x585 PF: > { %s6390_s28 = sld [smem:[#allocation17_spill]]  ;;  %s2918_s30 = sand.u32 1, %s5346_s24  }
 0x586   : > { %p6392_p1 = scmp.ge.s32.totalorder %s5358_s27, 2  ;;  %s2919_s23 = scalar_lea.sflag [#allocation6], %s2918_s30 }
 0x58b   : > { %p6391_p12 = scmp.ne.s32.totalorder %s6390_s28, 0 }
 0x58d   : > { %p5112_p2 = pnand %p6392_p1, %p6391_p12 }
 0x58f   : > { %5341 = dma.done.wait (!%p5112_p2), %s2919_s23, 1024  }
 0x590   : > { %5343 = vsyncadd (!%p5112_p2), %s2919_s23, 4294966272  ;;  %p22_p4 = scmp.ge.s32.totalorder %s5552_s22, 4   ;;  %s6393_s24 = smov %s5350_s25 }
 0x591   : > { %s6394_s25 = smov %s5354_s26  ;;  %s6395_s26 = smov %s5562_s18 }
 0x592   : > { %s6396_s27 = smov %s5552_s22  ;;  %24 = sbr.rel (!%p22_p4) target bundleno = 7 (0x7), region = 117 }
 0x599   :  { %2924 = vsyncpa [#allocation5], 1 }
 0x59a   :  { %2926 = vsyncpa [#allocation5 + $0x1], 1 }
 0x59b   :  { %2927 = vsyncpa [#allocation8], 1 }
 0x59c   :  { %2928 = vsyncpa [#allocation11], 1 }
 0x59d   :  { %2929 = vsyncpa [#allocation6], 1 }
 0x59e   :  { %2931 = vsyncpa [#allocation6 + $0x1], 1 }

</bundles_post_ra>
